<compile_context>
chip_gen: v7x
topology: tpu7x:2x2x1
jax: 0.10.0
libtpu: 0.0.40
codegen_flags: <defaults>
</compile_context>

<pallas_src>
import functools

import numpy as np
import jax
import jax.numpy as jnp
from jax import lax
from jax.experimental import pallas as pl
from jax.experimental.pallas import tpu as pltpu

EPS = 1e-5
NPHASE = 4


def _round_up(x, m):
    return (x + m - 1) // m * m


# ------------------------------ fused kernel -------------------------------

def bottleneck_kernel(
    x_ref,                      # (TM, Cinp) f32   input tile (also identity)
    w1_ref,                     # (Cinp, Cp)  bf16
    w2_ref,                     # (9*Cp, Cp)  bf16  (tap kh*3+kw blocks along K)
    w3_ref,                     # (Cp, Cinp)  bf16
    g1_ref, b1_ref,             # (1, Cp)   f32
    g2_ref, b2_ref,             # (1, Cp)   f32
    g3_ref, b3_ref,             # (1, Cinp) f32
    o_ref,                      # (TM, Cinp) f32   output tile
    h1_ref,                     # (NT, H, W, Cp) f32  raw conv1 output
    h2_ref,                     # (NT, TM, Cp)   f32  raw conv2 output
    y3_ref,                     # (NT, TM, Cinp) f32  raw conv3 output
    ssum_ref, ssq_ref,          # (1, Cmax) f32   running per-channel sum/sumsq
    sc1_ref, sh1_ref,           # (1, Cp)   f32   bn1 fused scale/shift
    sc2_ref, sh2_ref,           # (1, Cp)   f32   bn2 fused scale/shift
    sc3_ref, sh3_ref,           # (1, Cinp) f32   bn3 fused scale/shift
    *, H, W, M, Cp, Cinp,
):
    p = pl.program_id(0)        # phase
    i = pl.program_id(1)        # M-tile (= image) index
    nt = pl.num_programs(1)
    TM = H * W
    inv_m = jnp.float32(1.0 / M)

    def accum_stats(y, c):
        """One-pass per-channel sum / sum-of-squares across M tiles."""
        @pl.when(i == 0)
        def _():
            ssum_ref[...] = jnp.zeros_like(ssum_ref)
            ssq_ref[...] = jnp.zeros_like(ssq_ref)
        ssum_ref[:, :c] = ssum_ref[:, :c] + jnp.sum(y, axis=0, keepdims=True)
        ssq_ref[:, :c] = ssq_ref[:, :c] + jnp.sum(y * y, axis=0, keepdims=True)

    def finalize_stats(g_ref, b_ref, sc_ref, sh_ref, c):
        """Biased batch stats -> fused scale/shift (used by the next phase)."""
        mean = ssum_ref[:, :c] * inv_m
        var = ssq_ref[:, :c] * inv_m - mean * mean
        scale = g_ref[...] * lax.rsqrt(var + EPS)
        sc_ref[...] = scale
        sh_ref[...] = b_ref[...] - mean * scale

    # ------------------ phase 0: conv1 (1x1) + bn1 stats -------------------
    @pl.when(p == 0)
    def _():
        x_bf = x_ref[...].astype(jnp.bfloat16)
        y1 = jnp.dot(x_bf, w1_ref[...], preferred_element_type=jnp.float32)
        accum_stats(y1, Cp)
        h1_ref[i] = y1.reshape(H, W, Cp)

        @pl.when(i == nt - 1)
        def _():
            finalize_stats(g1_ref, b1_ref, sc1_ref, sh1_ref, Cp)

    # -- phase 1: bn1+relu on read -> conv2 (3x3, pad=1) as one K=9*Cp matmul --
    @pl.when(p == 1)
    def _():
        hn = jnp.maximum(
            h1_ref[i] * sc1_ref[...].reshape(1, 1, Cp)
            + sh1_ref[...].reshape(1, 1, Cp), 0.0)                 # (H, W, Cp)
        # zero halo built in VMEM (no host-side im2col, no 9x HBM traffic)
        zc = jnp.zeros((H, 1, Cp), jnp.float32)
        hw = jnp.concatenate([zc, hn, zc], axis=1)                 # (H, W+2, Cp)
        zr = jnp.zeros((1, W + 2, Cp), jnp.float32)
        hp = jnp.concatenate([zr, hw, zr], axis=0)                 # (H+2, W+2, Cp)
        cols = [hp[kh:kh + H, kw:kw + W, :].reshape(TM, Cp)
                for kh in range(3) for kw in range(3)]
        xcat = jnp.concatenate(cols, axis=1).astype(jnp.bfloat16)  # (TM, 9*Cp)
        y2 = jnp.dot(xcat, w2_ref[...], preferred_element_type=jnp.float32)
        accum_stats(y2, Cp)
        h2_ref[i] = y2

        @pl.when(i == nt - 1)
        def _():
            finalize_stats(g2_ref, b2_ref, sc2_ref, sh2_ref, Cp)

    # -------- phase 2: bn2+relu on read -> conv3 (1x1) + bn3 stats ----------
    @pl.when(p == 2)
    def _():
        h2n = jnp.maximum(h2_ref[i] * sc2_ref[...] + sh2_ref[...], 0.0)
        y3 = jnp.dot(h2n.astype(jnp.bfloat16), w3_ref[...],
                     preferred_element_type=jnp.float32)           # (TM, Cinp)
        accum_stats(y3, Cinp)
        y3_ref[i] = y3

        @pl.when(i == nt - 1)
        def _():
            finalize_stats(g3_ref, b3_ref, sc3_ref, sh3_ref, Cinp)

    # ------------ phase 3: bn3 + residual add + relu -> output --------------
    @pl.when(p == 3)
    def _():
        o_ref[...] = jnp.maximum(
            y3_ref[i] * sc3_ref[...] + sh3_ref[...] + x_ref[...], 0.0)


# -------------------------------- wrapper ----------------------------------

def bottleneck_forward(x_nchw, params):
    N, Cin, H, W = x_nchw.shape
    C = params["w1"].shape[1]
    assert Cin == 4 * C, "stride=1 / downsample=None requires Cin == 4*C"
    M = N * H * W
    TM = H * W                        # one image of rows per M-tile
    NT = N
    Cp = _round_up(C, 128)            # lane-dense channel widths
    Cinp = _round_up(Cin, 128)
    Cmax = max(Cp, Cinp)

    # NCHW -> (M, Cin) NHWC-flat, zero-padded to lane width.
    # TODO(synk): in a full ResNet keep activations NHWC end-to-end; the two
    # transposes here are extra HBM passes that belong outside a single block.
    x2d = jnp.transpose(x_nchw, (0, 2, 3, 1)).reshape(M, Cin)
    x2d = jnp.pad(x2d, ((0, 0), (0, Cinp - Cin)))

    def pad_mat(w, rows, cols):
        return jnp.pad(w, ((0, rows - w.shape[0]), (0, cols - w.shape[1])))

    w1 = pad_mat(params["w1"], Cinp, Cp).astype(jnp.bfloat16)
    w2 = jnp.pad(params["w2"], ((0, 0), (0, Cp - C), (0, Cp - C)))
    w2 = w2.reshape(9 * Cp, Cp).astype(jnp.bfloat16)      # tap-major K blocks
    w3 = pad_mat(params["w3"], Cp, Cinp).astype(jnp.bfloat16)

    def pad_vec(v, c):
        v = v.reshape(1, -1)
        return jnp.pad(v, ((0, 0), (0, c - v.shape[1])))

    g1, b1 = pad_vec(params["g1"], Cp), pad_vec(params["b1"], Cp)
    g2, b2 = pad_vec(params["g2"], Cp), pad_vec(params["b2"], Cp)
    g3, b3 = pad_vec(params["g3"], Cinp), pad_vec(params["b3"], Cinp)

    kernel = functools.partial(bottleneck_kernel,
                               H=H, W=W, M=M, Cp=Cp, Cinp=Cinp)

    # x is only needed by phases 0 (conv1) and 3 (identity add); pin its block
    # index to the last fetched tile elsewhere so Pallas skips redundant DMAs.
    def x_map(p, i):
        need = jnp.logical_or(p == 0, p == NPHASE - 1)
        return (jnp.where(need, i, NT - 1), 0)

    # output is only written in the last phase; constant index before that so
    # each output block is written back exactly once, with final data.
    def out_map(p, i):
        return (jnp.where(p == NPHASE - 1, i, 0), 0)

    const = lambda p, i: (0, 0)       # weights / BN params stay VMEM-resident

    out = pl.pallas_call(
        kernel,
        out_shape=jax.ShapeDtypeStruct((M, Cinp), jnp.float32),
        grid=(NPHASE, NT),
        in_specs=[
            pl.BlockSpec((TM, Cinp), x_map),
            pl.BlockSpec((Cinp, Cp), const),
            pl.BlockSpec((9 * Cp, Cp), const),
            pl.BlockSpec((Cp, Cinp), const),
            pl.BlockSpec((1, Cp), const), pl.BlockSpec((1, Cp), const),
            pl.BlockSpec((1, Cp), const), pl.BlockSpec((1, Cp), const),
            pl.BlockSpec((1, Cinp), const), pl.BlockSpec((1, Cinp), const),
        ],
        out_specs=pl.BlockSpec((TM, Cinp), out_map),
        scratch_shapes=[
            pltpu.VMEM((NT, H, W, Cp), jnp.float32),   # raw conv1 output
            pltpu.VMEM((NT, TM, Cp), jnp.float32),     # raw conv2 output
            pltpu.VMEM((NT, TM, Cinp), jnp.float32),   # raw conv3 output
            pltpu.VMEM((1, Cmax), jnp.float32),        # per-channel sum
            pltpu.VMEM((1, Cmax), jnp.float32),        # per-channel sumsq
            pltpu.VMEM((1, Cp), jnp.float32),          # bn1 scale
            pltpu.VMEM((1, Cp), jnp.float32),          # bn1 shift
            pltpu.VMEM((1, Cp), jnp.float32),          # bn2 scale
            pltpu.VMEM((1, Cp), jnp.float32),          # bn2 shift
            pltpu.VMEM((1, Cinp), jnp.float32),        # bn3 scale
            pltpu.VMEM((1, Cinp), jnp.float32),        # bn3 shift
        ],
        compiler_params=pltpu.CompilerParams(
            # Both axes are sequential: phases depend on each other and the
            # M-tile axis carries the BN-stats reduction.
            # TODO(synk): hoist stats into a separate reduction pass so the M
            # axis can be marked "parallel" for v7x's two TensorCores.
            dimension_semantics=("arbitrary", "arbitrary")),
    )(x2d, w1, w2, w3, g1, b1, g2, b2, g3, b3)

    out = out[:, :Cin].reshape(N, H, W, Cin)
    return jnp.transpose(out, (0, 3, 1, 2))


# ------------------------------ pure-JAX ref --------------------------------

def ref_forward(x_nchw, p):
    x = jnp.transpose(x_nchw, (0, 2, 3, 1))

    def bn(y, g, b):
        m = jnp.mean(y, axis=(0, 1, 2), keepdims=True)
        v = jnp.mean((y - m) ** 2, axis=(0, 1, 2), keepdims=True)
        return (y - m) * jax.lax.rsqrt(v + EPS) * g.reshape(1, 1, 1, -1) \
            + b.reshape(1, 1, 1, -1)

    h = jnp.einsum('nhwc,cd->nhwd', x, p["w1"])
    h = jax.nn.relu(bn(h, p["g1"], p["b1"]))
    N, H, W, C = h.shape
    hp = jnp.pad(h, ((0, 0), (1, 1), (1, 1), (0, 0)))
    h2 = jnp.zeros_like(h)
    for kh in range(3):
        for kw in range(3):
            h2 = h2 + jnp.einsum('nhwc,cd->nhwd',
                                 hp[:, kh:kh + H, kw:kw + W, :],
                                 p["w2"][kh * 3 + kw])
    h2 = jax.nn.relu(bn(h2, p["g2"], p["b2"]))
    h3 = jnp.einsum('nhwc,cd->nhwd', h2, p["w3"])
    out = jax.nn.relu(bn(h3, p["g3"], p["b3"]) + x)
    return jnp.transpose(out, (0, 3, 1, 2))


# ---------------------------------- main ------------------------------------

if __name__ == "__main__":
    out_channels = 8
    in_channels = out_channels * 4        # expansion = 4, downsample=None
    N, H, W = 2, 8, 8

    key = jax.random.PRNGKey(0)
    ks = jax.random.split(key, 10)

    def bn_params(k, c):
        kg, kb = jax.random.split(k)
        g = 1.0 + 0.1 * jax.random.normal(kg, (1, c), jnp.float32)
        b = 0.1 * jax.random.normal(kb, (1, c), jnp.float32)
        return g, b

    g1, b1 = bn_params(ks[1], out_channels)
    g2, b2 = bn_params(ks[3], out_channels)
    g3, b3 = bn_params(ks[5], 4 * out_channels)

    params = {
        # conv1: torch (Cout,Cin,1,1) -> (Cin,Cout)
        "w1": jax.random.normal(ks[0], (in_channels, out_channels),
                                jnp.float32) / np.sqrt(in_channels),
        "g1": g1, "b1": b1,
        # conv2: torch (Cout,Cin,3,3) -> (9,Cin,Cout), tap index = kh*3+kw
        "w2": jax.random.normal(ks[2], (9, out_channels, out_channels),
                                jnp.float32) / np.sqrt(9 * out_channels),
        "g2": g2, "b2": b2,
        # conv3: torch (4*C,C,1,1) -> (C,4*C)
        "w3": jax.random.normal(ks[4], (out_channels, 4 * out_channels),
                                jnp.float32) / np.sqrt(out_channels),
        "g3": g3, "b3": b3,
    }

    x = jax.random.normal(ks[6], (N, in_channels, H, W), jnp.float32)

    out = bottleneck_forward(x, params)
    out = jax.block_until_ready(out)

    ref = ref_forward(x, params)
    err = float(jnp.max(jnp.abs(out - ref)))
    ok = bool(jnp.allclose(out, ref, atol=5e-2, rtol=5e-2))
    if not (out.shape == (N, in_channels, H, W) and ok):
        raise RuntimeError(f"mismatch: shape={out.shape} max_abs_err={err}")

    print("KERNEL_OK")
</pallas_src>

<mosaic_0001>
module attributes {stable_mosaic.version = 11 : i64} {
  func.func @bottleneck_kernel(%arg0: i32, %arg1: i32, %arg2: memref<64x128xf32, #tpu.memory_space<vmem>>, %arg3: memref<128x128xbf16, #tpu.memory_space<vmem>>, %arg4: memref<1152x128xbf16, #tpu.memory_space<vmem>>, %arg5: memref<128x128xbf16, #tpu.memory_space<vmem>>, %arg6: memref<1x128xf32, #tpu.memory_space<vmem>>, %arg7: memref<1x128xf32, #tpu.memory_space<vmem>>, %arg8: memref<1x128xf32, #tpu.memory_space<vmem>>, %arg9: memref<1x128xf32, #tpu.memory_space<vmem>>, %arg10: memref<1x128xf32, #tpu.memory_space<vmem>>, %arg11: memref<1x128xf32, #tpu.memory_space<vmem>>, %arg12: memref<64x128xf32, #tpu.memory_space<vmem>>, %arg13: memref<2x8x8x128xf32, #tpu.memory_space<vmem>>, %arg14: memref<2x64x128xf32, #tpu.memory_space<vmem>>, %arg15: memref<2x64x128xf32, #tpu.memory_space<vmem>>, %arg16: memref<1x128xf32, #tpu.memory_space<vmem>>, %arg17: memref<1x128xf32, #tpu.memory_space<vmem>>, %arg18: memref<1x128xf32, #tpu.memory_space<vmem>>, %arg19: memref<1x128xf32, #tpu.memory_space<vmem>>, %arg20: memref<1x128xf32, #tpu.memory_space<vmem>>, %arg21: memref<1x128xf32, #tpu.memory_space<vmem>>, %arg22: memref<1x128xf32, #tpu.memory_space<vmem>>, %arg23: memref<1x128xf32, #tpu.memory_space<vmem>>) attributes {dimension_semantics = [#tpu.dimension_semantics<arbitrary>, #tpu.dimension_semantics<arbitrary>], iteration_bounds = array<i64: 4, 2>, scalar_prefetch = 0 : i64, scratch_operands = 11 : i64, tpu.core_type = #tpu.core_type<tc>, window_params = [{transform_indices = @transform_0, window_bounds = array<i64: 64, 128>}, {pipeline_mode = #tpu.pipeline_mode<synchronous>, transform_indices = @transform_1, window_bounds = array<i64: 128, 128>}, {pipeline_mode = #tpu.pipeline_mode<synchronous>, transform_indices = @transform_2, window_bounds = array<i64: 1152, 128>}, {pipeline_mode = #tpu.pipeline_mode<synchronous>, transform_indices = @transform_3, window_bounds = array<i64: 128, 128>}, {pipeline_mode = #tpu.pipeline_mode<synchronous>, transform_indices = @transform_4, window_bounds = array<i64: 1, 128>}, {pipeline_mode = #tpu.pipeline_mode<synchronous>, transform_indices = @transform_5, window_bounds = array<i64: 1, 128>}, {pipeline_mode = #tpu.pipeline_mode<synchronous>, transform_indices = @transform_6, window_bounds = array<i64: 1, 128>}, {pipeline_mode = #tpu.pipeline_mode<synchronous>, transform_indices = @transform_7, window_bounds = array<i64: 1, 128>}, {pipeline_mode = #tpu.pipeline_mode<synchronous>, transform_indices = @transform_8, window_bounds = array<i64: 1, 128>}, {pipeline_mode = #tpu.pipeline_mode<synchronous>, transform_indices = @transform_9, window_bounds = array<i64: 1, 128>}, {transform_indices = @transform_10, window_bounds = array<i64: 64, 128>}]} {
    %c0_i32 = arith.constant 0 : i32
    %0 = arith.cmpi eq, %arg0, %c0_i32 : i32
    %1 = arith.extui %0 : i1 to i32
    %cst = arith.constant 7.812500e-03 : f32
    %c0_i32_0 = arith.constant 0 : i32
    %2 = arith.cmpi ne, %1, %c0_i32_0 : i32
    scf.if %2 {
      %c0 = arith.constant 0 : index
      %c0_6 = arith.constant 0 : index
      %12 = vector.load %arg2[%c0, %c0_6] : memref<64x128xf32, #tpu.memory_space<vmem>>, vector<64x128xf32>
      %13 = arith.truncf %12 : vector<64x128xf32> to vector<64x128xbf16>
      %c0_7 = arith.constant 0 : index
      %c0_8 = arith.constant 0 : index
      %14 = vector.load %arg3[%c0_7, %c0_8] : memref<128x128xbf16, #tpu.memory_space<vmem>>, vector<128x128xbf16>
      %cst_9 = arith.constant dense<0.000000e+00> : vector<64x128xf32>
      %15 = tpu.matmul %13, %14, %cst_9 {dimension_numbers = #tpu.dot_dimension_numbers<[1], [0], [0], [1], [0, 0, 1, 1], [], []>} : vector<64x128xbf16>, vector<128x128xbf16>, vector<64x128xf32> -> vector<64x128xf32>
      %c0_i32_10 = arith.constant 0 : i32
      %16 = arith.cmpi eq, %arg1, %c0_i32_10 : i32
      %17 = arith.extui %16 : i1 to i32
      %c0_i32_11 = arith.constant 0 : i32
      %18 = arith.cmpi ne, %17, %c0_i32_11 : i32
      scf.if %18 {
        %cst_27 = arith.constant 0.000000e+00 : f32
        %38 = vector.broadcast %cst_27 : f32 to vector<1x128xf32>
        %c0_28 = arith.constant 0 : index
        %c0_29 = arith.constant 0 : index
        %39 = vector.load %arg16[%c0_28, %c0_29] : memref<1x128xf32, #tpu.memory_space<vmem>>, vector<1x128xf32>
        tpu.vector_store %arg16[%c0_28, %c0_29], %38 {strides = array<i32>} : memref<1x128xf32, #tpu.memory_space<vmem>>, vector<1x128xf32>,
        %cst_30 = arith.constant 0.000000e+00 : f32
        %40 = vector.broadcast %cst_30 : f32 to vector<1x128xf32>
        %c0_31 = arith.constant 0 : index
        %c0_32 = arith.constant 0 : index
        %41 = vector.load %arg17[%c0_31, %c0_32] : memref<1x128xf32, #tpu.memory_space<vmem>>, vector<1x128xf32>
        tpu.vector_store %arg17[%c0_31, %c0_32], %40 {strides = array<i32>} : memref<1x128xf32, #tpu.memory_space<vmem>>, vector<1x128xf32>,
      } else {
      }
      %c0_12 = arith.constant 0 : index
      %c0_13 = arith.constant 0 : index
      %19 = vector.load %arg16[%c0_12, %c0_13] : memref<1x128xf32, #tpu.memory_space<vmem>>, vector<1x128xf32>
      %cst_14 = arith.constant dense<0.000000e+00> : vector<128xf32>
      %20 = vector.multi_reduction <add>, %15, %cst_14 [0] : vector<64x128xf32> to vector<128xf32>
      %21 = vector.shape_cast %20 : vector<128xf32> to vector<1x128xf32>
      %22 = arith.addf %19, %21 : vector<1x128xf32>
      %c0_15 = arith.constant 0 : index
      %c0_16 = arith.constant 0 : index
      %23 = vector.load %arg16[%c0_15, %c0_16] : memref<1x128xf32, #tpu.memory_space<vmem>>, vector<1x128xf32>
      tpu.vector_store %arg16[%c0_15, %c0_16], %22 {strides = array<i32>} : memref<1x128xf32, #tpu.memory_space<vmem>>, vector<1x128xf32>,
      %c0_17 = arith.constant 0 : index
      %c0_18 = arith.constant 0 : index
      %24 = vector.load %arg17[%c0_17, %c0_18] : memref<1x128xf32, #tpu.memory_space<vmem>>, vector<1x128xf32>
      %25 = arith.mulf %15, %15 : vector<64x128xf32>
      %cst_19 = arith.constant dense<0.000000e+00> : vector<128xf32>
      %26 = vector.multi_reduction <add>, %25, %cst_19 [0] : vector<64x128xf32> to vector<128xf32>
      %27 = vector.shape_cast %26 : vector<128xf32> to vector<1x128xf32>
      %28 = arith.addf %24, %27 : vector<1x128xf32>
      %c0_20 = arith.constant 0 : index
      %c0_21 = arith.constant 0 : index
      %29 = vector.load %arg17[%c0_20, %c0_21] : memref<1x128xf32, #tpu.memory_space<vmem>>, vector<1x128xf32>
      tpu.vector_store %arg17[%c0_20, %c0_21], %28 {strides = array<i32>} : memref<1x128xf32, #tpu.memory_space<vmem>>, vector<1x128xf32>,
      %30 = vector.shape_cast %15 : vector<64x128xf32> to vector<8x8x128xf32>
      %31 = arith.index_cast %arg1 : i32 to index
      %c0_22 = arith.constant 0 : index
      %c0_23 = arith.constant 0 : index
      %c0_24 = arith.constant 0 : index
      %32 = vector.load %arg13[%31, %c0_22, %c0_23, %c0_24] : memref<2x8x8x128xf32, #tpu.memory_space<vmem>>, vector<1x8x8x128xf32>
      %33 = vector.shape_cast %32 : vector<1x8x8x128xf32> to vector<8x8x128xf32>
      %34 = vector.shape_cast %30 : vector<8x8x128xf32> to vector<1x8x8x128xf32>
      tpu.vector_store %arg13[%31, %c0_22, %c0_23, %c0_24], %34 {strides = array<i32>} : memref<2x8x8x128xf32, #tpu.memory_space<vmem>>, vector<1x8x8x128xf32>,
      %c1_i32_25 = arith.constant 1 : i32
      %35 = arith.cmpi eq, %arg1, %c1_i32_25 : i32
      %36 = arith.extui %35 : i1 to i32
      %c0_i32_26 = arith.constant 0 : i32
      %37 = arith.cmpi ne, %36, %c0_i32_26 : i32
      scf.if %37 {
        %c0_27 = arith.constant 0 : index
        %c0_28 = arith.constant 0 : index
        %38 = vector.load %arg16[%c0_27, %c0_28] : memref<1x128xf32, #tpu.memory_space<vmem>>, vector<1x128xf32>
        %39 = vector.broadcast %cst : f32 to vector<1x128xf32>
        %40 = arith.mulf %38, %39 : vector<1x128xf32>
        %c0_29 = arith.constant 0 : index
        %c0_30 = arith.constant 0 : index
        %41 = vector.load %arg17[%c0_29, %c0_30] : memref<1x128xf32, #tpu.memory_space<vmem>>, vector<1x128xf32>
        %42 = vector.broadcast %cst : f32 to vector<1x128xf32>
        %43 = arith.mulf %41, %42 : vector<1x128xf32>
        %44 = arith.mulf %40, %40 : vector<1x128xf32>
        %45 = arith.subf %43, %44 : vector<1x128xf32>
        %c0_31 = arith.constant 0 : index
        %c0_32 = arith.constant 0 : index
        %46 = vector.load %arg6[%c0_31, %c0_32] : memref<1x128xf32, #tpu.memory_space<vmem>>, vector<1x128xf32>
        %cst_33 = arith.constant 9.99999974E-6 : f32
        %47 = vector.broadcast %cst_33 : f32 to vector<1x128xf32>
        %48 = arith.addf %45, %47 : vector<1x128xf32>
        %49 = math.rsqrt %48 : vector<1x128xf32>
        %50 = arith.mulf %46, %49 : vector<1x128xf32>
        %c0_34 = arith.constant 0 : index
        %c0_35 = arith.constant 0 : index
        %51 = vector.load %arg18[%c0_34, %c0_35] : memref<1x128xf32, #tpu.memory_space<vmem>>, vector<1x128xf32>
        tpu.vector_store %arg18[%c0_34, %c0_35], %50 {strides = array<i32>} : memref<1x128xf32, #tpu.memory_space<vmem>>, vector<1x128xf32>,
        %c0_36 = arith.constant 0 : index
        %c0_37 = arith.constant 0 : index
        %52 = vector.load %arg7[%c0_36, %c0_37] : memref<1x128xf32, #tpu.memory_space<vmem>>, vector<1x128xf32>
        %53 = arith.mulf %40, %50 : vector<1x128xf32>
        %54 = arith.subf %52, %53 : vector<1x128xf32>
        %c0_38 = arith.constant 0 : index
        %c0_39 = arith.constant 0 : index
        %55 = vector.load %arg19[%c0_38, %c0_39] : memref<1x128xf32, #tpu.memory_space<vmem>>, vector<1x128xf32>
        tpu.vector_store %arg19[%c0_38, %c0_39], %54 {strides = array<i32>} : memref<1x128xf32, #tpu.memory_space<vmem>>, vector<1x128xf32>,
      } else {
      }
    } else {
    }
    %c1_i32 = arith.constant 1 : i32
    %3 = arith.cmpi eq, %arg0, %c1_i32 : i32
    %4 = arith.extui %3 : i1 to i32
    %cst_1 = arith.constant 7.812500e-03 : f32
    %c0_i32_2 = arith.constant 0 : i32
    %5 = arith.cmpi ne, %4, %c0_i32_2 : i32
    scf.if %5 {
      %12 = arith.index_cast %arg1 : i32 to index
      %c0 = arith.constant 0 : index
      %c0_6 = arith.constant 0 : index
      %c0_7 = arith.constant 0 : index
      %13 = vector.load %arg13[%12, %c0, %c0_6, %c0_7] : memref<2x8x8x128xf32, #tpu.memory_space<vmem>>, vector<1x8x8x128xf32>
      %14 = vector.shape_cast %13 : vector<1x8x8x128xf32> to vector<8x8x128xf32>
      %c0_8 = arith.constant 0 : index
      %c0_9 = arith.constant 0 : index
      %15 = vector.load %arg18[%c0_8, %c0_9] : memref<1x128xf32, #tpu.memory_space<vmem>>, vector<1x128xf32>
      %16 = vector.shape_cast %15 : vector<1x128xf32> to vector<1x1x128xf32>
      %17 = vector.broadcast %16 : vector<1x1x128xf32> to vector<8x8x128xf32>
      %18 = arith.mulf %14, %17 : vector<8x8x128xf32>
      %c0_10 = arith.constant 0 : index
      %c0_11 = arith.constant 0 : index
      %19 = vector.load %arg19[%c0_10, %c0_11] : memref<1x128xf32, #tpu.memory_space<vmem>>, vector<1x128xf32>
      %20 = vector.shape_cast %19 : vector<1x128xf32> to vector<1x1x128xf32>
      %21 = vector.broadcast %20 : vector<1x1x128xf32> to vector<8x8x128xf32>
      %22 = arith.addf %18, %21 : vector<8x8x128xf32>
      %cst_12 = arith.constant 0.000000e+00 : f32
      %23 = vector.broadcast %cst_12 : f32 to vector<8x8x128xf32>
      %24 = arith.maximumf %22, %23 : vector<8x8x128xf32>
      %cst_13 = arith.constant 0.000000e+00 : f32
      %25 = vector.broadcast %cst_13 : f32 to vector<8x1x128xf32>
      %26 = tpu.concatenate %25, %24, %25 in 1 : vector<8x1x128xf32>, vector<8x8x128xf32>, vector<8x1x128xf32> -> vector<8x10x128xf32>
      %cst_14 = arith.constant 0.000000e+00 : f32
      %27 = vector.broadcast %cst_14 : f32 to vector<1x10x128xf32>
      %28 = tpu.concatenate %27, %26, %27 in 0 : vector<1x10x128xf32>, vector<8x10x128xf32>, vector<1x10x128xf32> -> vector<10x10x128xf32>
      %29 = vector.extract_strided_slice %28 {offsets = [0, 0, 0], sizes = [8, 8, 128], strides = [1, 1, 1]} : vector<10x10x128xf32> to vector<8x8x128xf32>
      %30 = vector.shape_cast %29 : vector<8x8x128xf32> to vector<64x128xf32>
      %31 = vector.extract_strided_slice %28 {offsets = [0, 1, 0], sizes = [8, 8, 128], strides = [1, 1, 1]} : vector<10x10x128xf32> to vector<8x8x128xf32>
      %32 = vector.shape_cast %31 : vector<8x8x128xf32> to vector<64x128xf32>
      %33 = vector.extract_strided_slice %28 {offsets = [0, 2, 0], sizes = [8, 8, 128], strides = [1, 1, 1]} : vector<10x10x128xf32> to vector<8x8x128xf32>
      %34 = vector.shape_cast %33 : vector<8x8x128xf32> to vector<64x128xf32>
      %35 = vector.extract_strided_slice %28 {offsets = [1, 0, 0], sizes = [8, 8, 128], strides = [1, 1, 1]} : vector<10x10x128xf32> to vector<8x8x128xf32>
      %36 = vector.shape_cast %35 : vector<8x8x128xf32> to vector<64x128xf32>
      %37 = vector.extract_strided_slice %28 {offsets = [1, 1, 0], sizes = [8, 8, 128], strides = [1, 1, 1]} : vector<10x10x128xf32> to vector<8x8x128xf32>
      %38 = vector.shape_cast %37 : vector<8x8x128xf32> to vector<64x128xf32>
      %39 = vector.extract_strided_slice %28 {offsets = [1, 2, 0], sizes = [8, 8, 128], strides = [1, 1, 1]} : vector<10x10x128xf32> to vector<8x8x128xf32>
      %40 = vector.shape_cast %39 : vector<8x8x128xf32> to vector<64x128xf32>
      %41 = vector.extract_strided_slice %28 {offsets = [2, 0, 0], sizes = [8, 8, 128], strides = [1, 1, 1]} : vector<10x10x128xf32> to vector<8x8x128xf32>
      %42 = vector.shape_cast %41 : vector<8x8x128xf32> to vector<64x128xf32>
      %43 = vector.extract_strided_slice %28 {offsets = [2, 1, 0], sizes = [8, 8, 128], strides = [1, 1, 1]} : vector<10x10x128xf32> to vector<8x8x128xf32>
      %44 = vector.shape_cast %43 : vector<8x8x128xf32> to vector<64x128xf32>
      %45 = vector.extract_strided_slice %28 {offsets = [2, 2, 0], sizes = [8, 8, 128], strides = [1, 1, 1]} : vector<10x10x128xf32> to vector<8x8x128xf32>
      %46 = vector.shape_cast %45 : vector<8x8x128xf32> to vector<64x128xf32>
      %47 = tpu.concatenate %30, %32, %34, %36, %38, %40, %42, %44, %46 in 1 : vector<64x128xf32>, vector<64x128xf32>, vector<64x128xf32>, vector<64x128xf32>, vector<64x128xf32>, vector<64x128xf32>, vector<64x128xf32>, vector<64x128xf32>, vector<64x128xf32> -> vector<64x1152xf32>
      %48 = arith.truncf %47 : vector<64x1152xf32> to vector<64x1152xbf16>
      %c0_15 = arith.constant 0 : index
      %c0_16 = arith.constant 0 : index
      %49 = vector.load %arg4[%c0_15, %c0_16] : memref<1152x128xbf16, #tpu.memory_space<vmem>>, vector<1152x128xbf16>
      %cst_17 = arith.constant dense<0.000000e+00> : vector<64x128xf32>
      %50 = tpu.matmul %48, %49, %cst_17 {dimension_numbers = #tpu.dot_dimension_numbers<[1], [0], [0], [1], [0, 0, 1, 1], [], []>} : vector<64x1152xbf16>, vector<1152x128xbf16>, vector<64x128xf32> -> vector<64x128xf32>
      %c0_i32_18 = arith.constant 0 : i32
      %51 = arith.cmpi eq, %arg1, %c0_i32_18 : i32
      %52 = arith.extui %51 : i1 to i32
      %c0_i32_19 = arith.constant 0 : i32
      %53 = arith.cmpi ne, %52, %c0_i32_19 : i32
      scf.if %53 {
        %cst_34 = arith.constant 0.000000e+00 : f32
        %72 = vector.broadcast %cst_34 : f32 to vector<1x128xf32>
        %c0_35 = arith.constant 0 : index
        %c0_36 = arith.constant 0 : index
        %73 = vector.load %arg16[%c0_35, %c0_36] : memref<1x128xf32, #tpu.memory_space<vmem>>, vector<1x128xf32>
        tpu.vector_store %arg16[%c0_35, %c0_36], %72 {strides = array<i32>} : memref<1x128xf32, #tpu.memory_space<vmem>>, vector<1x128xf32>,
        %cst_37 = arith.constant 0.000000e+00 : f32
        %74 = vector.broadcast %cst_37 : f32 to vector<1x128xf32>
        %c0_38 = arith.constant 0 : index
        %c0_39 = arith.constant 0 : index
        %75 = vector.load %arg17[%c0_38, %c0_39] : memref<1x128xf32, #tpu.memory_space<vmem>>, vector<1x128xf32>
        tpu.vector_store %arg17[%c0_38, %c0_39], %74 {strides = array<i32>} : memref<1x128xf32, #tpu.memory_space<vmem>>, vector<1x128xf32>,
      } else {
      }
      %c0_20 = arith.constant 0 : index
      %c0_21 = arith.constant 0 : index
      %54 = vector.load %arg16[%c0_20, %c0_21] : memref<1x128xf32, #tpu.memory_space<vmem>>, vector<1x128xf32>
      %cst_22 = arith.constant dense<0.000000e+00> : vector<128xf32>
      %55 = vector.multi_reduction <add>, %50, %cst_22 [0] : vector<64x128xf32> to vector<128xf32>
      %56 = vector.shape_cast %55 : vector<128xf32> to vector<1x128xf32>
      %57 = arith.addf %54, %56 : vector<1x128xf32>
      %c0_23 = arith.constant 0 : index
      %c0_24 = arith.constant 0 : index
      %58 = vector.load %arg16[%c0_23, %c0_24] : memref<1x128xf32, #tpu.memory_space<vmem>>, vector<1x128xf32>
      tpu.vector_store %arg16[%c0_23, %c0_24], %57 {strides = array<i32>} : memref<1x128xf32, #tpu.memory_space<vmem>>, vector<1x128xf32>,
      %c0_25 = arith.constant 0 : index
      %c0_26 = arith.constant 0 : index
      %59 = vector.load %arg17[%c0_25, %c0_26] : memref<1x128xf32, #tpu.memory_space<vmem>>, vector<1x128xf32>
      %60 = arith.mulf %50, %50 : vector<64x128xf32>
      %cst_27 = arith.constant dense<0.000000e+00> : vector<128xf32>
      %61 = vector.multi_reduction <add>, %60, %cst_27 [0] : vector<64x128xf32> to vector<128xf32>
      %62 = vector.shape_cast %61 : vector<128xf32> to vector<1x128xf32>
      %63 = arith.addf %59, %62 : vector<1x128xf32>
      %c0_28 = arith.constant 0 : index
      %c0_29 = arith.constant 0 : index
      %64 = vector.load %arg17[%c0_28, %c0_29] : memref<1x128xf32, #tpu.memory_space<vmem>>, vector<1x128xf32>
      tpu.vector_store %arg17[%c0_28, %c0_29], %63 {strides = array<i32>} : memref<1x128xf32, #tpu.memory_space<vmem>>, vector<1x128xf32>,
      %65 = arith.index_cast %arg1 : i32 to index
      %c0_30 = arith.constant 0 : index
      %c0_31 = arith.constant 0 : index
      %66 = vector.load %arg14[%65, %c0_30, %c0_31] : memref<2x64x128xf32, #tpu.memory_space<vmem>>, vector<1x64x128xf32>
      %67 = vector.shape_cast %66 : vector<1x64x128xf32> to vector<64x128xf32>
      %68 = vector.shape_cast %50 : vector<64x128xf32> to vector<1x64x128xf32>
      tpu.vector_store %arg14[%65, %c0_30, %c0_31], %68 {strides = array<i32>} : memref<2x64x128xf32, #tpu.memory_space<vmem>>, vector<1x64x128xf32>,
      %c1_i32_32 = arith.constant 1 : i32
      %69 = arith.cmpi eq, %arg1, %c1_i32_32 : i32
      %70 = arith.extui %69 : i1 to i32
      %c0_i32_33 = arith.constant 0 : i32
      %71 = arith.cmpi ne, %70, %c0_i32_33 : i32
      scf.if %71 {
        %c0_34 = arith.constant 0 : index
        %c0_35 = arith.constant 0 : index
        %72 = vector.load %arg16[%c0_34, %c0_35] : memref<1x128xf32, #tpu.memory_space<vmem>>, vector<1x128xf32>
        %73 = vector.broadcast %cst_1 : f32 to vector<1x128xf32>
        %74 = arith.mulf %72, %73 : vector<1x128xf32>
        %c0_36 = arith.constant 0 : index
        %c0_37 = arith.constant 0 : index
        %75 = vector.load %arg17[%c0_36, %c0_37] : memref<1x128xf32, #tpu.memory_space<vmem>>, vector<1x128xf32>
        %76 = vector.broadcast %cst_1 : f32 to vector<1x128xf32>
        %77 = arith.mulf %75, %76 : vector<1x128xf32>
        %78 = arith.mulf %74, %74 : vector<1x128xf32>
        %79 = arith.subf %77, %78 : vector<1x128xf32>
        %c0_38 = arith.constant 0 : index
        %c0_39 = arith.constant 0 : index
        %80 = vector.load %arg8[%c0_38, %c0_39] : memref<1x128xf32, #tpu.memory_space<vmem>>, vector<1x128xf32>
        %cst_40 = arith.constant 9.99999974E-6 : f32
        %81 = vector.broadcast %cst_40 : f32 to vector<1x128xf32>
        %82 = arith.addf %79, %81 : vector<1x128xf32>
        %83 = math.rsqrt %82 : vector<1x128xf32>
        %84 = arith.mulf %80, %83 : vector<1x128xf32>
        %c0_41 = arith.constant 0 : index
        %c0_42 = arith.constant 0 : index
        %85 = vector.load %arg20[%c0_41, %c0_42] : memref<1x128xf32, #tpu.memory_space<vmem>>, vector<1x128xf32>
        tpu.vector_store %arg20[%c0_41, %c0_42], %84 {strides = array<i32>} : memref<1x128xf32, #tpu.memory_space<vmem>>, vector<1x128xf32>,
        %c0_43 = arith.constant 0 : index
        %c0_44 = arith.constant 0 : index
        %86 = vector.load %arg9[%c0_43, %c0_44] : memref<1x128xf32, #tpu.memory_space<vmem>>, vector<1x128xf32>
        %87 = arith.mulf %74, %84 : vector<1x128xf32>
        %88 = arith.subf %86, %87 : vector<1x128xf32>
        %c0_45 = arith.constant 0 : index
        %c0_46 = arith.constant 0 : index
        %89 = vector.load %arg21[%c0_45, %c0_46] : memref<1x128xf32, #tpu.memory_space<vmem>>, vector<1x128xf32>
        tpu.vector_store %arg21[%c0_45, %c0_46], %88 {strides = array<i32>} : memref<1x128xf32, #tpu.memory_space<vmem>>, vector<1x128xf32>,
      } else {
      }
    } else {
    }
    %c2_i32 = arith.constant 2 : i32
    %6 = arith.cmpi eq, %arg0, %c2_i32 : i32
    %7 = arith.extui %6 : i1 to i32
    %cst_3 = arith.constant 7.812500e-03 : f32
    %c0_i32_4 = arith.constant 0 : i32
    %8 = arith.cmpi ne, %7, %c0_i32_4 : i32
    scf.if %8 {
      %12 = arith.index_cast %arg1 : i32 to index
      %c0 = arith.constant 0 : index
      %c0_6 = arith.constant 0 : index
      %13 = vector.load %arg14[%12, %c0, %c0_6] : memref<2x64x128xf32, #tpu.memory_space<vmem>>, vector<1x64x128xf32>
      %14 = vector.shape_cast %13 : vector<1x64x128xf32> to vector<64x128xf32>
      %c0_7 = arith.constant 0 : index
      %c0_8 = arith.constant 0 : index
      %15 = vector.load %arg20[%c0_7, %c0_8] : memref<1x128xf32, #tpu.memory_space<vmem>>, vector<1x128xf32>
      %16 = vector.broadcast %15 : vector<1x128xf32> to vector<64x128xf32>
      %17 = arith.mulf %14, %16 : vector<64x128xf32>
      %c0_9 = arith.constant 0 : index
      %c0_10 = arith.constant 0 : index
      %18 = vector.load %arg21[%c0_9, %c0_10] : memref<1x128xf32, #tpu.memory_space<vmem>>, vector<1x128xf32>
      %19 = vector.broadcast %18 : vector<1x128xf32> to vector<64x128xf32>
      %20 = arith.addf %17, %19 : vector<64x128xf32>
      %cst_11 = arith.constant 0.000000e+00 : f32
      %21 = vector.broadcast %cst_11 : f32 to vector<64x128xf32>
      %22 = arith.maximumf %20, %21 : vector<64x128xf32>
      %23 = arith.truncf %22 : vector<64x128xf32> to vector<64x128xbf16>
      %c0_12 = arith.constant 0 : index
      %c0_13 = arith.constant 0 : index
      %24 = vector.load %arg5[%c0_12, %c0_13] : memref<128x128xbf16, #tpu.memory_space<vmem>>, vector<128x128xbf16>
      %cst_14 = arith.constant dense<0.000000e+00> : vector<64x128xf32>
      %25 = tpu.matmul %23, %24, %cst_14 {dimension_numbers = #tpu.dot_dimension_numbers<[1], [0], [0], [1], [0, 0, 1, 1], [], []>} : vector<64x128xbf16>, vector<128x128xbf16>, vector<64x128xf32> -> vector<64x128xf32>
      %c0_i32_15 = arith.constant 0 : i32
      %26 = arith.cmpi eq, %arg1, %c0_i32_15 : i32
      %27 = arith.extui %26 : i1 to i32
      %c0_i32_16 = arith.constant 0 : i32
      %28 = arith.cmpi ne, %27, %c0_i32_16 : i32
      scf.if %28 {
        %cst_31 = arith.constant 0.000000e+00 : f32
        %47 = vector.broadcast %cst_31 : f32 to vector<1x128xf32>
        %c0_32 = arith.constant 0 : index
        %c0_33 = arith.constant 0 : index
        %48 = vector.load %arg16[%c0_32, %c0_33] : memref<1x128xf32, #tpu.memory_space<vmem>>, vector<1x128xf32>
        tpu.vector_store %arg16[%c0_32, %c0_33], %47 {strides = array<i32>} : memref<1x128xf32, #tpu.memory_space<vmem>>, vector<1x128xf32>,
        %cst_34 = arith.constant 0.000000e+00 : f32
        %49 = vector.broadcast %cst_34 : f32 to vector<1x128xf32>
        %c0_35 = arith.constant 0 : index
        %c0_36 = arith.constant 0 : index
        %50 = vector.load %arg17[%c0_35, %c0_36] : memref<1x128xf32, #tpu.memory_space<vmem>>, vector<1x128xf32>
        tpu.vector_store %arg17[%c0_35, %c0_36], %49 {strides = array<i32>} : memref<1x128xf32, #tpu.memory_space<vmem>>, vector<1x128xf32>,
      } else {
      }
      %c0_17 = arith.constant 0 : index
      %c0_18 = arith.constant 0 : index
      %29 = vector.load %arg16[%c0_17, %c0_18] : memref<1x128xf32, #tpu.memory_space<vmem>>, vector<1x128xf32>
      %cst_19 = arith.constant dense<0.000000e+00> : vector<128xf32>
      %30 = vector.multi_reduction <add>, %25, %cst_19 [0] : vector<64x128xf32> to vector<128xf32>
      %31 = vector.shape_cast %30 : vector<128xf32> to vector<1x128xf32>
      %32 = arith.addf %29, %31 : vector<1x128xf32>
      %c0_20 = arith.constant 0 : index
      %c0_21 = arith.constant 0 : index
      %33 = vector.load %arg16[%c0_20, %c0_21] : memref<1x128xf32, #tpu.memory_space<vmem>>, vector<1x128xf32>
      tpu.vector_store %arg16[%c0_20, %c0_21], %32 {strides = array<i32>} : memref<1x128xf32, #tpu.memory_space<vmem>>, vector<1x128xf32>,
      %c0_22 = arith.constant 0 : index
      %c0_23 = arith.constant 0 : index
      %34 = vector.load %arg17[%c0_22, %c0_23] : memref<1x128xf32, #tpu.memory_space<vmem>>, vector<1x128xf32>
      %35 = arith.mulf %25, %25 : vector<64x128xf32>
      %cst_24 = arith.constant dense<0.000000e+00> : vector<128xf32>
      %36 = vector.multi_reduction <add>, %35, %cst_24 [0] : vector<64x128xf32> to vector<128xf32>
      %37 = vector.shape_cast %36 : vector<128xf32> to vector<1x128xf32>
      %38 = arith.addf %34, %37 : vector<1x128xf32>
      %c0_25 = arith.constant 0 : index
      %c0_26 = arith.constant 0 : index
      %39 = vector.load %arg17[%c0_25, %c0_26] : memref<1x128xf32, #tpu.memory_space<vmem>>, vector<1x128xf32>
      tpu.vector_store %arg17[%c0_25, %c0_26], %38 {strides = array<i32>} : memref<1x128xf32, #tpu.memory_space<vmem>>, vector<1x128xf32>,
      %40 = arith.index_cast %arg1 : i32 to index
      %c0_27 = arith.constant 0 : index
      %c0_28 = arith.constant 0 : index
      %41 = vector.load %arg15[%40, %c0_27, %c0_28] : memref<2x64x128xf32, #tpu.memory_space<vmem>>, vector<1x64x128xf32>
      %42 = vector.shape_cast %41 : vector<1x64x128xf32> to vector<64x128xf32>
      %43 = vector.shape_cast %25 : vector<64x128xf32> to vector<1x64x128xf32>
      tpu.vector_store %arg15[%40, %c0_27, %c0_28], %43 {strides = array<i32>} : memref<2x64x128xf32, #tpu.memory_space<vmem>>, vector<1x64x128xf32>,
      %c1_i32_29 = arith.constant 1 : i32
      %44 = arith.cmpi eq, %arg1, %c1_i32_29 : i32
      %45 = arith.extui %44 : i1 to i32
      %c0_i32_30 = arith.constant 0 : i32
      %46 = arith.cmpi ne, %45, %c0_i32_30 : i32
      scf.if %46 {
        %c0_31 = arith.constant 0 : index
        %c0_32 = arith.constant 0 : index
        %47 = vector.load %arg16[%c0_31, %c0_32] : memref<1x128xf32, #tpu.memory_space<vmem>>, vector<1x128xf32>
        %48 = vector.broadcast %cst_3 : f32 to vector<1x128xf32>
        %49 = arith.mulf %47, %48 : vector<1x128xf32>
        %c0_33 = arith.constant 0 : index
        %c0_34 = arith.constant 0 : index
        %50 = vector.load %arg17[%c0_33, %c0_34] : memref<1x128xf32, #tpu.memory_space<vmem>>, vector<1x128xf32>
        %51 = vector.broadcast %cst_3 : f32 to vector<1x128xf32>
        %52 = arith.mulf %50, %51 : vector<1x128xf32>
        %53 = arith.mulf %49, %49 : vector<1x128xf32>
        %54 = arith.subf %52, %53 : vector<1x128xf32>
        %c0_35 = arith.constant 0 : index
        %c0_36 = arith.constant 0 : index
        %55 = vector.load %arg10[%c0_35, %c0_36] : memref<1x128xf32, #tpu.memory_space<vmem>>, vector<1x128xf32>
        %cst_37 = arith.constant 9.99999974E-6 : f32
        %56 = vector.broadcast %cst_37 : f32 to vector<1x128xf32>
        %57 = arith.addf %54, %56 : vector<1x128xf32>
        %58 = math.rsqrt %57 : vector<1x128xf32>
        %59 = arith.mulf %55, %58 : vector<1x128xf32>
        %c0_38 = arith.constant 0 : index
        %c0_39 = arith.constant 0 : index
        %60 = vector.load %arg22[%c0_38, %c0_39] : memref<1x128xf32, #tpu.memory_space<vmem>>, vector<1x128xf32>
        tpu.vector_store %arg22[%c0_38, %c0_39], %59 {strides = array<i32>} : memref<1x128xf32, #tpu.memory_space<vmem>>, vector<1x128xf32>,
        %c0_40 = arith.constant 0 : index
        %c0_41 = arith.constant 0 : index
        %61 = vector.load %arg11[%c0_40, %c0_41] : memref<1x128xf32, #tpu.memory_space<vmem>>, vector<1x128xf32>
        %62 = arith.mulf %49, %59 : vector<1x128xf32>
        %63 = arith.subf %61, %62 : vector<1x128xf32>
        %c0_42 = arith.constant 0 : index
        %c0_43 = arith.constant 0 : index
        %64 = vector.load %arg23[%c0_42, %c0_43] : memref<1x128xf32, #tpu.memory_space<vmem>>, vector<1x128xf32>
        tpu.vector_store %arg23[%c0_42, %c0_43], %63 {strides = array<i32>} : memref<1x128xf32, #tpu.memory_space<vmem>>, vector<1x128xf32>,
      } else {
      }
    } else {
    }
    %c3_i32 = arith.constant 3 : i32
    %9 = arith.cmpi eq, %arg0, %c3_i32 : i32
    %10 = arith.extui %9 : i1 to i32
    %c0_i32_5 = arith.constant 0 : i32
    %11 = arith.cmpi ne, %10, %c0_i32_5 : i32
    scf.if %11 {
      %12 = arith.index_cast %arg1 : i32 to index
      %c0 = arith.constant 0 : index
      %c0_6 = arith.constant 0 : index
      %13 = vector.load %arg15[%12, %c0, %c0_6] : memref<2x64x128xf32, #tpu.memory_space<vmem>>, vector<1x64x128xf32>
      %14 = vector.shape_cast %13 : vector<1x64x128xf32> to vector<64x128xf32>
      %c0_7 = arith.constant 0 : index
      %c0_8 = arith.constant 0 : index
      %15 = vector.load %arg22[%c0_7, %c0_8] : memref<1x128xf32, #tpu.memory_space<vmem>>, vector<1x128xf32>
      %16 = vector.broadcast %15 : vector<1x128xf32> to vector<64x128xf32>
      %17 = arith.mulf %14, %16 : vector<64x128xf32>
      %c0_9 = arith.constant 0 : index
      %c0_10 = arith.constant 0 : index
      %18 = vector.load %arg23[%c0_9, %c0_10] : memref<1x128xf32, #tpu.memory_space<vmem>>, vector<1x128xf32>
      %19 = vector.broadcast %18 : vector<1x128xf32> to vector<64x128xf32>
      %20 = arith.addf %17, %19 : vector<64x128xf32>
      %c0_11 = arith.constant 0 : index
      %c0_12 = arith.constant 0 : index
      %21 = vector.load %arg2[%c0_11, %c0_12] : memref<64x128xf32, #tpu.memory_space<vmem>>, vector<64x128xf32>
      %22 = arith.addf %20, %21 : vector<64x128xf32>
      %cst_13 = arith.constant 0.000000e+00 : f32
      %23 = vector.broadcast %cst_13 : f32 to vector<64x128xf32>
      %24 = arith.maximumf %22, %23 : vector<64x128xf32>
      %c0_14 = arith.constant 0 : index
      %c0_15 = arith.constant 0 : index
      %25 = vector.load %arg12[%c0_14, %c0_15] : memref<64x128xf32, #tpu.memory_space<vmem>>, vector<64x128xf32>
      tpu.vector_store %arg12[%c0_14, %c0_15], %24 {strides = array<i32>} : memref<64x128xf32, #tpu.memory_space<vmem>>, vector<64x128xf32>,
    } else {
    }
    return
  }
  func.func @transform_0(%arg0: i32, %arg1: i32) -> (i32, i32) {
    %c0_i32 = arith.constant 0 : i32
    %0 = arith.cmpi eq, %arg0, %c0_i32 : i32
    %c3_i32 = arith.constant 3 : i32
    %1 = arith.cmpi eq, %arg0, %c3_i32 : i32
    %2 = arith.ori %0, %1 : i1
    %c1_i32 = arith.constant 1 : i32
    %3 = arith.select %2, %arg1, %c1_i32 : i32
    %c0_i32_0 = arith.constant 0 : i32
    %c0_i32_1 = arith.constant 0 : i32
    return %3, %c0_i32_0 : i32, i32
  }
  func.func @transform_1(%arg0: i32, %arg1: i32) -> (i32, i32) {
    %c0_i32 = arith.constant 0 : i32
    %c0_i32_0 = arith.constant 0 : i32
    %c0_i32_1 = arith.constant 0 : i32
    return %c0_i32, %c0_i32_0 : i32, i32
  }
  func.func @transform_2(%arg0: i32, %arg1: i32) -> (i32, i32) {
    %c0_i32 = arith.constant 0 : i32
    %c0_i32_0 = arith.constant 0 : i32
    %c0_i32_1 = arith.constant 0 : i32
    return %c0_i32, %c0_i32_0 : i32, i32
  }
  func.func @transform_3(%arg0: i32, %arg1: i32) -> (i32, i32) {
    %c0_i32 = arith.constant 0 : i32
    %c0_i32_0 = arith.constant 0 : i32
    %c0_i32_1 = arith.constant 0 : i32
    return %c0_i32, %c0_i32_0 : i32, i32
  }
  func.func @transform_4(%arg0: i32, %arg1: i32) -> (i32, i32) {
    %c0_i32 = arith.constant 0 : i32
    %c0_i32_0 = arith.constant 0 : i32
    %c0_i32_1 = arith.constant 0 : i32
    return %c0_i32, %c0_i32_0 : i32, i32
  }
  func.func @transform_5(%arg0: i32, %arg1: i32) -> (i32, i32) {
    %c0_i32 = arith.constant 0 : i32
    %c0_i32_0 = arith.constant 0 : i32
    %c0_i32_1 = arith.constant 0 : i32
    return %c0_i32, %c0_i32_0 : i32, i32
  }
  func.func @transform_6(%arg0: i32, %arg1: i32) -> (i32, i32) {
    %c0_i32 = arith.constant 0 : i32
    %c0_i32_0 = arith.constant 0 : i32
    %c0_i32_1 = arith.constant 0 : i32
    return %c0_i32, %c0_i32_0 : i32, i32
  }
  func.func @transform_7(%arg0: i32, %arg1: i32) -> (i32, i32) {
    %c0_i32 = arith.constant 0 : i32
    %c0_i32_0 = arith.constant 0 : i32
    %c0_i32_1 = arith.constant 0 : i32
    return %c0_i32, %c0_i32_0 : i32, i32
  }
  func.func @transform_8(%arg0: i32, %arg1: i32) -> (i32, i32) {
    %c0_i32 = arith.constant 0 : i32
    %c0_i32_0 = arith.constant 0 : i32
    %c0_i32_1 = arith.constant 0 : i32
    return %c0_i32, %c0_i32_0 : i32, i32
  }
  func.func @transform_9(%arg0: i32, %arg1: i32) -> (i32, i32) {
    %c0_i32 = arith.constant 0 : i32
    %c0_i32_0 = arith.constant 0 : i32
    %c0_i32_1 = arith.constant 0 : i32
    return %c0_i32, %c0_i32_0 : i32, i32
  }
  func.func @transform_10(%arg0: i32, %arg1: i32) -> (i32, i32) {
    %c3_i32 = arith.constant 3 : i32
    %0 = arith.cmpi eq, %arg0, %c3_i32 : i32
    %c0_i32 = arith.constant 0 : i32
    %1 = arith.select %0, %arg1, %c0_i32 : i32
    %c0_i32_0 = arith.constant 0 : i32
    %c0_i32_1 = arith.constant 0 : i32
    return %1, %c0_i32_0 : i32, i32
  }
}

</mosaic_0001>

<bundles_post_ra>
// kernel: tpu_custom_call.1
= control target key start
LH: loop header
LB: loop body
LE: loop exit
PB: predicated region body
PF: predicated region fallthrough
CT: control target
= control target key end

     0   :  { %s4039_s0 = inlined_call_operand.hbm [shape: f32[128,128], index: 0, kind: input, shape index: {}]   ;;  %s4040_s1 = inlined_call_operand.hbm [shape: bf16[128,128], index: 1, kind: input, shape index: {}]   ;;  %s4041_s2 = inlined_call_operand.hbm [shape: bf16[1152,128], index: 2, kind: input, shape index: {}]   ;;  %s4042_s3 = inlined_call_operand.hbm [shape: bf16[128,128], index: 3, kind: input, shape index: {}]   ;;  %s4043_s4 = inlined_call_operand.vmem [shape: f32[1,128], index: 4, kind: input, shape index: {}]   ;;  %s4044_s5 = inlined_call_operand.vmem [shape: f32[1,128], index: 5, kind: input, shape index: {}]   ;;  %s4045_s6 = inlined_call_operand.vmem [shape: f32[1,128], index: 6, kind: input, shape index: {}]   ;;  %s4046_s7 = inlined_call_operand.vmem [shape: f32[1,128], index: 7, kind: input, shape index: {}]   ;;  %s4047_s8 = inlined_call_operand.vmem [shape: f32[1,128], index: 8, kind: input, shape index: {}]   ;;  %s4048_s9 = inlined_call_operand.vmem [shape: f32[1,128], index: 9, kind: input, shape index: {}]   ;;  %s4049_s10 = inlined_call_operand.hbm [shape: f32[128,128], index: 10, kind: output, shape index: {}]  }
   0x1   :  { %4067 = sst [smem:[#allocation32_spill]] %s4040_s1 }
   0x2   :  { %4068 = sst [smem:[#allocation33_spill]] %s4041_s2 }
   0x3   :  { %4069 = sst [smem:[#allocation34_spill]] %s4042_s3 }
   0x4   :  { %4070 = sst [smem:[#allocation35_spill]] %s4043_s4 }
   0x5   :  { %4071 = sst [smem:[#allocation36_spill]] %s4044_s5 }
   0x6   :  { %4072 = sst [smem:[#allocation37_spill]] %s4045_s6 }
   0x7   :  { %4073 = sst [smem:[#allocation38_spill]] %s4046_s7 }
   0x8   :  { %4074 = sst [smem:[#allocation39_spill]] %s4047_s8 }
   0x9   :  { %4075 = sst [smem:[#allocation40_spill]] %s4048_s9 }
   0xa   :  { %4076 = sst [smem:[#allocation41_spill]] %s4049_s10 }
   0xb   :  { %15 = vsyncpa [#allocation14], 0 }
   0xc   :  { %17 = vsyncpa [#allocation14 + $0x1], 0 }
   0xd   :  { %18 = vsyncpa [#allocation17], 0 }
   0xe   :  { %19 = vsyncpa [#allocation20], 0 }
   0xf   :  { %20 = vsyncpa [#allocation15], 0 }
  0x10   :  { %22 = vsyncpa [#allocation15 + $0x1], 0  ;;  %s3399_s13 = smov 0   ;;  %s3401_s14 = smov 0  }
  0x11   :  { %s3403_s15 = smov 0   ;;  %s3405_s16 = smov 0  }
  0x12   :  { %s3407_s17 = smov 0   ;;  %s3409_s18 = smov 0  }
  0x13   :  { %s3411_s19 = smov 0   ;;  %s3413_s20 = smov 0  }
  0x14   :  { %s3415_s21 = smov 0   ;;  %s3417_s22 = smov 0  }
  0x15   :  { %s3419_s23 = smov 0  }
  0x16 LB: > { %4077 = sst [smem:[#allocation26_spill]] %s3286_s13  ;;  %s2339_s24 = sadd.s32 4294967295, %s3326_s23   ;;  %s3326_s23 = sphi %s3419_s23, %s28_s23   ;;  %s3322_s22 = sphi %s3417_s22, %s4127_s22   ;;  %s3318_s21 = sphi %s3415_s21, %s4135_s21   ;;  %s3314_s20 = sphi %s3413_s20, %s4126_s20   ;;  %s3310_s19 = sphi %s3411_s19, %s4134_s19   ;;  %s3306_s18 = sphi %s3409_s18, %s4133_s18   ;;  %s3302_s17 = sphi %s3407_s17, %s4132_s17   ;;  %s3298_s16 = sphi %s3405_s16, %s4131_s16   ;;  %s3294_s15 = sphi %s3403_s15, %s4130_s15   ;;  %s3290_s14 = sphi %s3401_s14, %s4129_s14   ;;  %s3286_s13 = sphi %s3399_s13, %s4128_s13  }
  0x17   : > { %4078 = sst [smem:[#allocation27_spill]] %s3310_s19  ;;  %s2340_s25 = sadd.s32 4294967294, %s3326_s23  }
  0x18   : > { %4079 = sst [smem:[#allocation28_spill]] %s3322_s22  ;;  %p68_p0 = scmp.ne.s32.totalorder %s3302_s17, %s3298_s16 }
  0x19   : > { %p3455_p1 = scmp.eq.s32.totalorder %s2339_s24, 0  ;;  %p284_p2 = scmp.ne.s32.totalorder %s3294_s15, %s3290_s14 }
  0x1a   : > { %p285_p4 = scmp.eq.s32.totalorder %s2339_s24, 7  ;;  %p290_p5 = scmp.ne.s32.totalorder %s3290_s14, %s3286_s13 }
  0x1b   : > { %s4080_s26 = scalar_select %p3455_p1, 1, 0 }
  0x1c   : > { %p3464_p3 = por %p3455_p1, %p68_p0  ;;  %p291_p6 = scmp.eq.s32.totalorder %s2340_s25, 7 }
  0x1d   : > { %p3470_p7 = por %p285_p4, %p284_p2  ;;  %p2341_p8 = scmp.ge.s32.totalorder %s3326_s23, 1 }
  0x1e   : > { %s4081_s28 = scalar_select %p3464_p3, 1, 0 }
  0x1f   : > { %s4082_s29 = scalar_select %p3470_p7, 1, 0 }
  0x20   : > { %p3475_p9 = por %p291_p6, %p290_p5  ;;  %p298_p10 = scmp.lt.s32.totalorder %s3326_s23, 9 }
  0x21   : > { %4083 = sst [smem:[#allocation29_spill]] %s4082_s29  ;;  %s3328_s12 = smov [#allocation16]  }
  0x22   : > { %s4084_s30 = scalar_select %p3475_p9, 1, 0 }
  0x23   : > { %p3480_p11 = pnand %p2341_p8, %p298_p10  ;;  %s310_s16 = sshll.u32 %s3328_s12, 4  ;;  %s3484_s16 = int_to_ptr.vmem [resolvable:$true] %s310_s16 }
  0x24   : > { %4085 = sst [smem:[#allocation30_spill]] %s4084_s30  ;;  %s3329_s25 = smov [#allocation18]  }
  0x25   : > { %s4086_s11 = scalar_select %p3480_p11, 1, 0 }
  0x26   : > { %p2860_p12 = pneg %p3480_p11  ;;  %s323_s27 = sshll.u32 %s3329_s25, 4  ;;  %s3494_s27 = int_to_ptr.vmem [resolvable:$true] %s323_s27 }
  0x27   : > { %s3330_s30 = smov [#allocation19]   ;;  %s4088_s1 = sld [smem:[#allocation32_spill]] }
  0x28   : > { %p3490_p13 = pnand %p2860_p12, %p3455_p1  ;;  %s3496_s13 = sshll.u32 %s3330_s30, 4  ;;  %s337_s13 = int_to_ptr.vmem [resolvable:$true] %s3496_s13 }
  0x2a   : > { %p3506_p2 = pneg %p3490_p13 }
  0x2d   : > { %s3082_s12 = scalar_lea.hbm %s4088_s1, 1024 }
  0x2e   : > { %p3083_p0 = scmp.ne.s32.totalorder %s4088_s1, %s3082_s12  ;;  %p3089_p6 = scmp.lt.u32.totalorder %s3082_s12, %s4088_s1 }
  0x30   : > { %p3085_p4 = pnand %p3506_p2, %p3083_p0 }
  0x32   : > { %p3086_p5 = pneg %p3085_p4 }
  0x34   : > { %p3091_p8 = pnand %p3089_p6, %p3086_p5 }
  0x36   : > { %3094 = shalt.err (!%p3091_p8)
}
  0x37   : > { %s3095_s8 = scalar_lea.vmem %s3484_s16, 1024  ;;  %p3103_p7 = scmp.lt.s32.totalorder %s3484_s16, %s3484_s16 }
  0x38   : > { %p3096_p10 = scmp.ne.s32.totalorder %s3484_s16, %s3095_s8  ;;  %p3104_p1 = scmp.lt.s32.totalorder %s3095_s8, %s3095_s8 }
  0x3a   : > { %p3098_p12 = pnand %p3096_p10, %p3506_p2  ;;  %p3105_p0 = por %p3104_p1, %p3103_p7 }
  0x3c   : > { %p3099_p9 = pneg %p3098_p12 }
  0x3e   : > { %p3106_p4 = pnand %p3105_p0, %p3099_p9 }
  0x40   : > { %3109 = shalt.err (!%p3106_p4)
}
  0x41   : > { %s3331_s9 = smov 64   ;;  %s3332_s10 = smov 4  }
  0x42   : > { %2863 = dma.hbm_to_vmem [thread:$0]  (!%p3490_p13), %s4088_s1, 1024, %s3484_s16, [#allocation17], %s3331_s9, %s3331_s9, %s3332_s10  }
  0x43   : > { %s4090_s2 = sld [smem:[#allocation33_spill]] }
  0x49   : > { %s3110_s8 = scalar_lea.hbm %s4090_s2, 9216 }
  0x4a   : > { %p3111_p1 = scmp.ne.s32.totalorder %s4090_s2, %s3110_s8  ;;  %p3117_p5 = scmp.lt.u32.totalorder %s3110_s8, %s4090_s2 }
  0x4c   : > { %p3113_p7 = pnand %p3111_p1, %p3506_p2 }
  0x4e   : > { %p3114_p9 = pneg %p3113_p7 }
  0x50   : > { %p3119_p6 = pnand %p3117_p5, %p3114_p9 }
  0x52   : > { %3122 = shalt.err (!%p3119_p6)
}
  0x53   : > { %s3123_s16 = scalar_lea.vmem %s3494_s27, 9216  ;;  %p3131_p0 = scmp.lt.s32.totalorder %s3494_s27, %s3494_s27 }
  0x54   : > { %p3124_p8 = scmp.ne.s32.totalorder %s3494_s27, %s3123_s16  ;;  %p3132_p4 = scmp.lt.s32.totalorder %s3123_s16, %s3123_s16 }
  0x56   : > { %p3126_p10 = pnand %p3124_p8, %p3506_p2  ;;  %p3133_p1 = por %p3132_p4, %p3131_p0 }
  0x58   : > { %p3127_p12 = pneg %p3126_p10 }
  0x5a   : > { %p3134_p7 = pnand %p3133_p1, %p3127_p12 }
  0x5c   : > { %3137 = shalt.err (!%p3134_p7)
}
  0x5d   : > { %2866 = dma.hbm_to_vmem [thread:$0]  (!%p3490_p13), %s4090_s2, 9216, %s3494_s27, [#allocation17], %s3331_s9, %s3331_s9, %s3332_s10  }
  0x5e   : > { %s4091_s3 = sld [smem:[#allocation34_spill]] }
  0x64   : > { %s3138_s29 = scalar_lea.hbm %s4091_s3, 1024 }
  0x65   : > { %p3139_p9 = scmp.ne.s32.totalorder %s4091_s3, %s3138_s29  ;;  %p3145_p8 = scmp.lt.u32.totalorder %s3138_s29, %s4091_s3 }
  0x67   : > { %p3141_p5 = pnand %p3139_p9, %p3506_p2 }
  0x69   : > { %p3142_p6 = pneg %p3141_p5 }
  0x6b   : > { %p3147_p10 = pnand %p3145_p8, %p3142_p6 }
  0x6d   : > { %3150 = shalt.err (!%p3147_p10)
}
  0x6e   : > { %s3151_s16 = scalar_lea.vmem %s337_s13, 1024  ;;  %p3159_p1 = scmp.lt.s32.totalorder %s337_s13, %s337_s13 }
  0x6f   : > { %p3152_p12 = scmp.ne.s32.totalorder %s337_s13, %s3151_s16  ;;  %p3160_p7 = scmp.lt.s32.totalorder %s3151_s16, %s3151_s16 }
  0x71   : > { %p3154_p0 = pnand %p3152_p12, %p3506_p2  ;;  %p3161_p3 = por %p3160_p7, %p3159_p1 }
  0x73   : > { %p3155_p4 = pneg %p3154_p0 }
  0x75   : > { %p3162_p11 = pnand %p3161_p3, %p3155_p4 }
  0x77   : > { %3165 = shalt.err (!%p3162_p11)
}
  0x78   : > { %2869 = dma.hbm_to_vmem [thread:$0]  (!%p3490_p13), %s4091_s3, 1024, %s337_s13, [#allocation20], %s3331_s9, %s3331_s9, %s3332_s10  }
  0x79   : > { %s37_s7 = sadd.s32 1, %s3318_s21  ;;  %s40_s24 = sadd.s32 1, %s3322_s22 }
  0x7a   : > { %p38_p3 = scmp.ge.s32.totalorder %s37_s7, 2  ;;  %p44_p11 = scmp.eq.s32.totalorder %s3322_s22, 0 }
  0x7b   : > { %p45_p2 = scmp.eq.s32.totalorder %s3322_s22, 3  ;;  %s55_s5 = sadd.s32 1, %s3306_s18 }
  0x7c   : > { %s4137_s7 = smov (%p38_p3, %s37_s7), 0  ;;  %s4139_s24 = smov (!%p38_p3, %s40_s24), %s3322_s22 }
  0x7d   : > { %p46_p9 = por %p45_p2, %p44_p11  ;;  %p42_p5 = scmp.ge.s32.totalorder %s4139_s24, 4 }
  0x7e   : > { %p62_p6 = scmp.ne.s32.totalorder %s3306_s18, %s3302_s17  ;;  %p63_p13 = scmp.eq.s32.totalorder %s3326_s23, 0 }
  0x7f   : > { %s47_s6 = scalar_select %p46_p9, %s3318_s21, 1 }
  0x80   : > { %s4141_s24 = smov (%p42_p5, %s4139_s24), 0  ;;  %p2881_p8 = scmp.lt.s32.totalorder %s3326_s23, 8 }
  0x81   : > { %4092 = sst [smem:[#allocation31_spill]] %s4141_s24  ;;  %p48_p10 = scmp.eq.s32.totalorder %s4141_s24, 0 }
  0x82   : > { %p49_p12 = scmp.eq.s32.totalorder %s4141_s24, 3  ;;  %p3597_p0 = por %p63_p13, %p62_p6 }
  0x83   : > { %s368_s9 = sand.u32 1, %s3306_s18   ;;  %s4094_s16 = sadd.s32 1, %s3294_s15 }
  0x84   : > { %p50_p4 = por %p49_p12, %p48_p10  ;;  %s2346_s25 = sshll.u32 %s368_s9, 6 }
  0x85   : > { %s268_s10 = scalar_select %p45_p2, %s3318_s21, 0 }
  0x86   : > { %s51_s19 = scalar_select %p50_p4, %s4137_s7, 1 }
  0x87   : > { %s270_s29 = scalar_select %p49_p12, %s4137_s7, 0 }
  0x88   : > { %s52_s12 = ssub.s32 %s47_s6, %s51_s19  ;;  %s2526_s4 = sshll.u32 %s47_s6, 10 }
  0x89   : > { %p53_p1 = scmp.eq.s32.totalorder %s52_s12, 0  ;;  %s271_s30 = ssub.s32 %s268_s10, %s270_s29 }
  0x8a   : > { %p272_p7 = scmp.eq.s32.totalorder %s271_s30, 0  ;;  %s372_s1 = scalar_lea.vmem [#allocation13], %s2346_s25 }
  0x8b   : > { %s3608_s8 = scalar_select %p53_p1, %s3306_s18, %s55_s5  }
  0x8c   : > { %s3613_s27 = scalar_select %p272_p7, %s3294_s15, %s4094_s16  }
  0x8d   : > { %s383_s2 = sshll.u32 %s372_s1, 4  ;;  %s3618_s22 = scalar_lea.hbm %s4039_s0, %s2526_s4  ;;  %s3620_s2 = int_to_ptr.vmem [resolvable:$true] %s383_s2 }
  0x8e   : > { %p3626_p3 = pnand %p2881_p8, %p3597_p0  ;;  %s3630_s1 = scalar_lea.sflag [#allocation14], %s368_s9 }
  0x8f   : > { %s3166_s6 = scalar_lea.hbm %s3618_s22, 1024  ;;  %s3171_s13 = scalar_lea.hbm %s4039_s0, 2048 }
  0x90   : > { %p3167_p11 = scmp.ne.s32.totalorder %s3618_s22, %s3166_s6  ;;  %p3168_p2 = pneg %p3626_p3 }
  0x91   : > { %p3172_p6 = scmp.lt.u32.totalorder %s3618_s22, %s4039_s0  ;;  %p3173_p13 = scmp.lt.u32.totalorder %s3171_s13, %s3166_s6 }
  0x92   : > { %p3169_p9 = pnand %p3168_p2, %p3167_p11  ;;  %p3175_p10 = scmp.lt.u32.totalorder %s3166_s6, %s3618_s22 }
  0x93   : > { %p3174_p8 = por %p3173_p13, %p3172_p6 }
  0x94   : > { %p3170_p5 = pneg %p3169_p9 }
  0x95   : > { %p3176_p12 = por %p3175_p10, %p3174_p8 }
  0x97   : > { %p3177_p0 = pnand %p3176_p12, %p3170_p5 }
  0x99   : > { %3180 = shalt.err (!%p3177_p0)
}
  0x9a   : > { %s3181_s9 = scalar_lea.vmem %s3620_s2, 1024  ;;  %s3333_s29 = smov [#allocation13]  }
  0x9b   : > { %p3182_p4 = scmp.ne.s32.totalorder %s3620_s2, %s3181_s9  ;;  %s3186_s12 = sshll.u32 %s3333_s29, 4  ;;  %s3187_s12 = int_to_ptr.vmem [resolvable:$false] %s3186_s12 }
  0x9c   : > { %s3188_s25 = scalar_lea.vmem %s3187_s12, 2048  ;;  %p3189_p11 = scmp.lt.s32.totalorder %s3620_s2, %s3187_s12 }
  0x9d   : > { %p3184_p1 = pnand %p3182_p4, %p3168_p2  ;;  %p3190_p9 = scmp.lt.s32.totalorder %s3188_s25, %s3181_s9 }
  0x9f   : > { %p3185_p7 = pneg %p3184_p1  ;;  %p3191_p6 = por %p3190_p9, %p3189_p11 }
  0xa1   : > { %p3192_p13 = pnand %p3191_p6, %p3185_p7 }
  0xa3   : > { %3195 = shalt.err (!%p3192_p13)
}
  0xa4   : > { %s3334_s30 = smov 128   ;;  %s3335_s16 = smov 8  }
  0xa5   : > { %2873 = dma.hbm_to_vmem [thread:$0]  (!%p3626_p3), %s3618_s22, 1024, %s3620_s2, %s3630_s1, %s3334_s30, %s3334_s30, %s3335_s16  }
  0xa6   : > { %p4096_p2 = scmp.ne.s32.totalorder %s4086_s11, 0 }
  0xa7   : > { %s397_s4 = sand.u32 (!%p4096_p2), 1, %s3302_s17   ;;  %p4097_p5 = scmp.ne.s32.totalorder (!%p4096_p2), %s4081_s28, 0 }
  0xa8   : > { %395 = sbr.rel (%p4096_p2) target bundleno = 1233 (0x4d1), region = 60  ;;  %s2350_s6 = sshll.u32 (!%p4096_p2), %s397_s4, 6 }
  0xa9   : > { %s398_s3 = scalar_lea.sflag (!%p4096_p2), [#allocation14], %s397_s4  ;;  %s3661_s24 = scalar_lea.vmem (!%p4096_p2), [#allocation13], %s2350_s6 }
  0xaf   : > { %3269 = dma.done.wait (%p4097_p5), %s398_s3, 1024  }
  0xb0   : > { %3271 = vsyncadd (%p4097_p5), %s398_s3, 4294966272  ;;  %p4098_p8 = scmp.ne.s32.totalorder %s4080_s26, 0 }
  0xb2   : > { %3273 = dma.done.wait (%p4098_p8), [#allocation17], 10240  }
  0xb3   : > { %3275 = vsyncadd (%p4098_p8), [#allocation17], 4294957056 }
  0xb4   : > { %3277 = dma.done.wait (%p4098_p8), [#allocation20], 1024  }
  0xb5   : > { %3279 = vsyncadd (%p4098_p8), [#allocation20], 4294966272  ;;  %s447_s2 = sand.u32 1, %s3290_s14   ;;  %p2355_p3 = scmp.ne.s32.totalorder %s3314_s20, 0 }
  0xb6   : > { %s2354_s22 = sshll.u32 %s447_s2, 6  ;;  %v2988_v0 = vld [vmem:[#allocation16] sm:$0xff] (!%p2355_p3)   ;;  %v2989_v1 = vld [vmem:[#allocation16 + $0x8] sm:$0xff] (!%p2355_p3)   ;;  %v2990_v2 = vld [vmem:[#allocation16 + $0x10] sm:$0xff] (!%p2355_p3)   ;;  %s4099_s26 = sld [smem:[#allocation27_spill]] (!%p2355_p3) }
  0xb7   : > { %s3678_s11 = scalar_lea.vmem [#allocation21], %s2354_s22  ;;  %462 = sbr.rel (%p2355_p3) target bundleno = 492 (0x1ec), region = 80  ;;  %2724 = vmatprep.subr.bf16.mxu0 (!%p2355_p3), %v2988_v0  ;;  %2796 = vmatprep.subr.bf16.mxu1 (!%p2355_p3), %v2988_v0  ;;  %v2991_v3 = vld [vmem:[#allocation16 + $0x18] sm:$0xff] (!%p2355_p3)   ;;  %v463_v4 = vld [vmem:[%s3661_s24] sm:$0xff] (!%p2355_p3)  ;;  %v464_v5 = vld [vmem:[%s3661_s24 + $0x8] sm:$0xff] (!%p2355_p3) }
  0xb8   : > { %2725 = vmatpush3.bf16.msra.mxu0 (!%p2355_p3), %v2988_v0  ;;  %2804 = vmatpush3.bf16.msra.mxu1 (!%p2355_p3), %v2988_v0  ;;  %v467_v6 = vld [vmem:[%s3661_s24 + $0x20] sm:$0xff] (!%p2355_p3)  ;;  %v471_v7 = vpack.c.bf16 (!%p2355_p3), %v464_v5, %v463_v4  ;;  %v468_v8 = vld [vmem:[%s3661_s24 + $0x28] sm:$0xff] (!%p2355_p3)  ;;  %v2994_v12 = vld [vmem:[#allocation16 + $0x30] sm:$0xff] (!%p2355_p3)  }
  0xb9   : > { %2726 = vmatprep.subr.bf16.mxu0 (!%p2355_p3), %v2989_v1  ;;  %2797 = vmatprep.subr.bf16.mxu1 (!%p2355_p3), %v2989_v1  ;;  %v473_v9 = vpack.c.bf16 (!%p2355_p3), %v468_v8, %v467_v6  ;;  %v2992_v10 = vld [vmem:[#allocation16 + $0x20] sm:$0xff] (!%p2355_p3)   ;;  %v2993_v11 = vld [vmem:[#allocation16 + $0x28] sm:$0xff] (!%p2355_p3)   ;;  %v2995_v13 = vld [vmem:[#allocation16 + $0x38] sm:$0xff] (!%p2355_p3)  }
  0xba   : > { %2740 = vmatprep.mubr.bf16.mxu0 (!%p2355_p3), %v471_v7  ;;  %v465_v14 = vld [vmem:[%s3661_s24 + $0x10] sm:$0xff] (!%p2355_p3)  ;;  %v466_v15 = vld [vmem:[%s3661_s24 + $0x18] sm:$0xff] (!%p2355_p3) }
  0xbb   : > { %2744 = vmatprep.mubr.bf16.mxu1 (!%p2355_p3), %v473_v9  ;;  %v469_v16 = vld [vmem:[%s3661_s24 + $0x30] sm:$0xff] (!%p2355_p3)  ;;  %v470_v17 = vld [vmem:[%s3661_s24 + $0x38] sm:$0xff] (!%p2355_p3)  ;;  %v472_v18 = vpack.c.bf16 (!%p2355_p3), %v466_v15, %v465_v14 }
  0xbc   : > { %2727 = vmatpush3.bf16.msra.mxu0 (!%p2355_p3), %v2989_v1  ;;  %2805 = vmatpush3.bf16.msra.mxu1 (!%p2355_p3), %v2989_v1  ;;  %v474_v19 = vpack.c.bf16 (!%p2355_p3), %v470_v17, %v469_v16  ;;  %p2364_p10 = scmp.ne.s32.totalorder (!%p2355_p3), %s4099_s26, 0 }
  0xbd   : > { %2728 = vmatprep.subr.bf16.mxu0 (!%p2355_p3), %v2990_v2  ;;  %2798 = vmatprep.subr.bf16.mxu1 (!%p2355_p3), %v2990_v2 }
  0xbe   : > { %v3336_v28 = vmov (!%p2364_p10), 0.0  }
  0xbf   : > { %608 = vst [vmem:[#allocation5] sm:$0x1] (!%p2364_p10), %v3336_v28  ;;  %609 = vst [vmem:[#allocation6] sm:$0x1] (!%p2364_p10), %v3336_v28 }
  0xc0   : > { %2729 = vmatpush3.bf16.msra.mxu0 %v2990_v2  ;;  %2806 = vmatpush3.bf16.msra.mxu1 %v2990_v2 }
  0xc1   : > { %2730 = vmatprep.subr.bf16.mxu0 %v2991_v3  ;;  %2799 = vmatprep.subr.bf16.mxu1 %v2991_v3 }
  0xc4   : > { %2731 = vmatpush3.bf16.msra.mxu0 %v2991_v3  ;;  %2807 = vmatpush3.bf16.msra.mxu1 %v2991_v3 }
  0xc5   : > { %2732 = vmatprep.subr.bf16.mxu0 %v2992_v10  ;;  %2800 = vmatprep.subr.bf16.mxu1 %v2992_v10 }
  0xc8   : > { %2733 = vmatpush3.bf16.msra.mxu0 %v2992_v10  ;;  %2808 = vmatpush3.bf16.msra.mxu1 %v2992_v10 }
  0xc9   : > { %2734 = vmatprep.subr.bf16.mxu0 %v2993_v11  ;;  %2801 = vmatprep.subr.bf16.mxu1 %v2993_v11 }
  0xcc   : > { %2735 = vmatpush3.bf16.msra.mxu0 %v2993_v11  ;;  %2809 = vmatpush3.bf16.msra.mxu1 %v2993_v11 }
  0xcd   : > { %2736 = vmatprep.subr.bf16.mxu0 %v2994_v12  ;;  %2802 = vmatprep.subr.bf16.mxu1 %v2994_v12 }
  0xd0   : > { %2737 = vmatpush3.bf16.msra.mxu0 %v2994_v12  ;;  %2810 = vmatpush3.bf16.msra.mxu1 %v2994_v12 }
  0xd1   : > { %2738 = vmatprep.subr.bf16.mxu0 %v2995_v13  ;;  %2803 = vmatprep.subr.bf16.mxu1 %v2995_v13 }
  0xd4   : > { %2739 = vmatpush3.bf16.msra.mxu0 %v2995_v13  ;;  %2811 = vmatpush3.bf16.msra.mxu1 %v2995_v13 }
  0xd7   : > { %2741 = vmatmul.mubr.bf16.vlgmr.msra.gmra.mrb[0].mxu0 %v472_v18  ;;  %2745 = vmatmul.mubr.bf16.vlgmr.msra.gmra.mrb[0].mxu1 %v474_v19 }
 0x1a7   : > { %607 = sbr.rel (%p2364_p10) target bundleno = 430 (0x1ae), region = 84 }
 0x1aa   : > { %v2742_v20 = vpop.f32.mrb[0].mxu0  ;;  %v2746_v21 = vpop.f32.mrb[0].mxu1 }
 0x1ab   : > { %v573_v22 = vpop.f32.mrb[1].mxu0  ;;  %v589_v23 = vpop.f32.mrb[1].mxu1 }
 0x1ac   : > { %v2743_v24 = vpop.f32.mrb[2].mxu0  ;;  %v2747_v25 = vpop.f32.mrb[2].mxu1 }
 0x1ad   : > { %v576_v26 = vpop.f32.mrb[3].mxu0  ;;  %v592_v27 = vpop.f32.mrb[3].mxu1 }
 0x1ae PF: > { %v611_v29 = vadd.f32 %v576_v26, %v573_v22  ;;  %s4100_s28 = sld [smem:[#allocation27_spill]]  ;;  %v627_v30 = vmul.f32 %v573_v22, %v573_v22  ;;  %v628_v31 = vmul.f32 %v576_v26, %v576_v26  ;;  %v629_v32 = vmul.f32 %v2742_v20, %v2742_v20  ;;  %v610_v60 = vld [vmem:[#allocation5] sm:$0x1]  ;;  %v626_v63 = vld [vmem:[#allocation6] sm:$0x1] }
 0x1af   : > { %v630_v34 = vmul.f32 %v2743_v24, %v2743_v24  ;;  %v631_v37 = vmul.f32 %v589_v23, %v589_v23  ;;  %v632_v40 = vmul.f32 %v592_v27, %v592_v27  ;;  %v633_v43 = vmul.f32 %v2746_v21, %v2746_v21 }
 0x1b0   : > { %v612_v33 = vadd.f32 %v2742_v20, %v611_v29  ;;  %v635_v35 = vadd.f32 %v628_v31, %v627_v30  ;;  %v634_v46 = vmul.f32 %v2747_v25, %v2747_v25 }
 0x1b2   : > { %v613_v36 = vadd.f32 %v2743_v24, %v612_v33  ;;  %v636_v38 = vadd.f32 %v635_v35, %v629_v32 }
 0x1b4   : > { %s2365_s5 = sshll.u32 %s4100_s28, 6  ;;  %v614_v39 = vadd.f32 %v613_v36, %v589_v23  ;;  %v637_v41 = vadd.f32 %v636_v38, %v630_v34  ;;  %p2366_p12 = scmp.ne.s32.totalorder %s4100_s28, 1 }
 0x1b5   : > { %s651_s1 = scalar_lea.vmem [#allocation2], %s2365_s5  ;;  %s4101_s19 = sld [smem:[#allocation35_spill]] (!%p2366_p12) }
 0x1b6   : > { %652 = vst [vmem:[%s651_s1] sm:$0xff] %v573_v22  ;;  %653 = vst [vmem:[%s651_s1 + $0x8] sm:$0xff] %v576_v26  ;;  %v615_v42 = vadd.f32 %v614_v39, %v592_v27  ;;  %v638_v44 = vadd.f32 %v637_v41, %v631_v37  ;;  %s4102_s12 = sld [smem:[#allocation36_spill]] (!%p2366_p12) }
 0x1b7   : > { %654 = vst [vmem:[%s651_s1 + $0x10] sm:$0xff] %v2742_v20  ;;  %655 = vst [vmem:[%s651_s1 + $0x18] sm:$0xff] %v2743_v24 }
 0x1b8   : > { %656 = vst [vmem:[%s651_s1 + $0x20] sm:$0xff] %v589_v23  ;;  %657 = vst [vmem:[%s651_s1 + $0x28] sm:$0xff] %v592_v27  ;;  %v616_v45 = vadd.f32 %v2746_v21, %v615_v42  ;;  %v639_v47 = vadd.f32 %v638_v44, %v632_v40 }
 0x1b9   : > { %658 = vst [vmem:[%s651_s1 + $0x30] sm:$0xff] %v2746_v21  ;;  %659 = vst [vmem:[%s651_s1 + $0x38] sm:$0xff] %v2747_v25 }
 0x1ba   : > { %v617_v48 = vadd.f32 %v2747_v25, %v616_v45  ;;  %v640_v49 = vadd.f32 %v639_v47, %v633_v43 }
 0x1bb   : > { %v670_v10 = vld [vmem:[%s4101_s19] sm:$0x1] (!%p2366_p12) }
 0x1bc   : > { %v618_v50 = vrot.slane %v617_v48, 4  ;;  %v641_v51 = vadd.f32 %v640_v49, %v634_v46  ;;  %v675_v13 = vld [vmem:[%s4102_s12] sm:$0x1] (!%p2366_p12) }
 0x1be   : > { %v619_v52 = vadd.f32 %v618_v50, %v617_v48  ;;  %v642_v53 = vrot.slane %v641_v51, 4 }
 0x1c0   : > { %v620_v54 = vrot.slane %v619_v52, 2  ;;  %v643_v55 = vadd.f32 %v642_v53, %v641_v51 }
 0x1c2   : > { %v621_v56 = vadd.f32 %v620_v54, %v619_v52  ;;  %v644_v57 = vrot.slane %v643_v55, 2 }
 0x1c4   : > { %v622_v58 = vrot.slane %v621_v56, 1  ;;  %v645_v59 = vadd.f32 %v644_v57, %v643_v55 }
 0x1c6   : > { %v623_v61 = vadd.f32 %v622_v58, %v621_v56  ;;  %v646_v62 = vrot.slane %v645_v59, 1  ;;  %663 = sbr.rel (%p2366_p12) target bundleno = 492 (0x1ec), region = 88 }
 0x1c8   : > { %v624_v0 = vadd.f32 %v623_v61, %v610_v60  ;;  %v647_v1 = vadd.f32 %v646_v62, %v645_v59 }
 0x1ca   : > { %625 = vst [vmem:[#allocation5] sm:$0x1] %v624_v0  ;;  %v648_v2 = vadd.f32 %v647_v1, %v626_v63 }
 0x1cc   : > { %649 = vst [vmem:[#allocation6] sm:$0x1] %v648_v2 }
 0x1d1   : > { %v664_v3 = vld [vmem:[#allocation5] sm:$0x1] }
 0x1d2   : > { %v665_v5 = vmul.f32 0.0078125, %v664_v3 }
 0x1d3   : > { %v666_v4 = vld [vmem:[#allocation6] sm:$0x1] }
 0x1d4   : > { %v667_v6 = vmul.f32 0.0078125, %v666_v4  ;;  %v668_v7 = vmul.f32 %v665_v5, %v665_v5 }
 0x1d6   : > { %v669_v8 = vsub.f32 %v667_v6, %v668_v7 }
 0x1d8   : > { %v671_v9 = vadd.f32 1e-05, %v669_v8 }
 0x1da   : > { %2996 = vrsqrt.f32 %v671_v9 }
 0x1e4   : > { %v2997_v11 = vpop.eup %2996 }
 0x1e5   : > { %v673_v12 = vmul.f32 %v2997_v11, %v670_v10 }
 0x1e7   : > { %674 = vst [vmem:[#allocation7] sm:$0x1] %v673_v12  ;;  %v676_v14 = vmul.f32 %v673_v12, %v665_v5 }
 0x1e9   : > { %v677_v15 = vsub.f32 %v675_v13, %v676_v14 }
 0x1eb   : > { %678 = vst [vmem:[#allocation8] sm:$0x1] %v677_v15 }
 0x1ec PF: > { %p2367_p0 = scmp.ne.s32.totalorder %s3314_s20, 1 }
 0x1ed   : > { %v2998_v16 = vld [vmem:[#allocation18 + $0x40] sm:$0xff] (!%p2367_p0)   ;;  %v3002_v20 = vld [vmem:[#allocation18 + $0x48] sm:$0xff] (!%p2367_p0)   ;;  %v3006_v24 = vld [vmem:[#allocation18 + $0x50] sm:$0xff] (!%p2367_p0)   ;;  %s4103_s25 = sld [smem:[#allocation27_spill]] (!%p2367_p0)  ;;  %vm755_vm0 = vcmask (!%p2367_p0), 1040384   ;;  %vm787_vm1 = vcmask (!%p2367_p0), 1046528  }
 0x1ee   : > { %682 = sbr.rel (%p2367_p0) target bundleno = 870 (0x366), region = 92  ;;  %v2999_v17 = vld [vmem:[#allocation18 + $0xc0] sm:$0xff] (!%p2367_p0)   ;;  %2540 = vmatprep.subr.bf16.mxu0 (!%p2367_p0), %v2998_v16  ;;  %v3003_v21 = vld [vmem:[#allocation18 + $0xc8] sm:$0xff] (!%p2367_p0)   ;;  %v3007_v25 = vld [vmem:[#allocation18 + $0xd0] sm:$0xff] (!%p2367_p0)   ;;  %v3337_v63 = vmov (!%p2367_p0), 0.0   ;;  %vm819_vm4 = vcmask (!%p2367_p0), 1045504  }
 0x1ef   : > { %v3000_v18 = vld [vmem:[#allocation18] sm:$0xff] (!%p2367_p0)   ;;  %2580 = vmatprep.subr.bf16.mxu1 (!%p2367_p0), %v2999_v17  ;;  %v3004_v22 = vld [vmem:[#allocation18 + $0x8] sm:$0xff] (!%p2367_p0)   ;;  %v3008_v26 = vld [vmem:[#allocation18 + $0x10] sm:$0xff] (!%p2367_p0)   ;;  %v3722_v0 = vrot.slane (!%p2367_p0), %v3337_v63, 1  ;;  %v3734_v4 = vrot.slane (!%p2367_p0), %v3337_v63, 2  ;;  %vm3338_vm5 = vmmov (!%p2367_p0), 1  }
 0x1f0   : > { %v3001_v19 = vld [vmem:[#allocation18 + $0x80] sm:$0xff] (!%p2367_p0)   ;;  %2541 = vmatpush3.bf16.msra.mxu0 (!%p2367_p0), %v3000_v18  ;;  %v3005_v23 = vld [vmem:[#allocation18 + $0x88] sm:$0xff] (!%p2367_p0)   ;;  %v3009_v27 = vld [vmem:[#allocation18 + $0x90] sm:$0xff] (!%p2367_p0)  }
 0x1f1   : > { %2581 = vmatpush3.bf16.msra.mxu1 (!%p2367_p0), %v3001_v19  ;;  %2542 = vmatprep.subr.bf16.mxu0 (!%p2367_p0), %v3002_v20  ;;  %v3010_v28 = vld [vmem:[#allocation18 + $0x58] sm:$0xff] (!%p2367_p0)   ;;  %v3014_v32 = vld [vmem:[#allocation18 + $0x60] sm:$0xff] (!%p2367_p0)   ;;  %v3018_v36 = vld [vmem:[#allocation18 + $0x68] sm:$0xff] (!%p2367_p0)  }
 0x1f2   : > { %2582 = vmatprep.subr.bf16.mxu1 (!%p2367_p0), %v3003_v21  ;;  %v3011_v29 = vld [vmem:[#allocation18 + $0xd8] sm:$0xff] (!%p2367_p0)   ;;  %v3015_v33 = vld [vmem:[#allocation18 + $0xe0] sm:$0xff] (!%p2367_p0)   ;;  %v3019_v37 = vld [vmem:[#allocation18 + $0xe8] sm:$0xff] (!%p2367_p0)  }
 0x1f3   : > { %v3012_v30 = vld [vmem:[#allocation18 + $0x18] sm:$0xff] (!%p2367_p0)   ;;  %v3016_v34 = vld [vmem:[#allocation18 + $0x20] sm:$0xff] (!%p2367_p0)   ;;  %v3020_v38 = vld [vmem:[#allocation18 + $0x28] sm:$0xff] (!%p2367_p0)   ;;  %s2368_s30 = sshll.u32 (!%p2367_p0), %s4103_s25, 6  ;;  %p2501_p4 = scmp.ne.s32.totalorder (!%p2367_p0), %s4103_s25, 0 }
 0x1f4   : > { %2543 = vmatpush3.bf16.msra.mxu0 (!%p2367_p0), %v3004_v22  ;;  %v3013_v31 = vld [vmem:[#allocation18 + $0x98] sm:$0xff] (!%p2367_p0)   ;;  %v3017_v35 = vld [vmem:[#allocation18 + $0xa0] sm:$0xff] (!%p2367_p0)   ;;  %v3021_v39 = vld [vmem:[#allocation18 + $0xa8] sm:$0xff] (!%p2367_p0)   ;;  %s3702_s16 = scalar_lea.vmem (!%p2367_p0), [#allocation2], %s2368_s30 }
 0x1f5   : > { %2583 = vmatpush3.bf16.msra.mxu1 %v3005_v23  ;;  %2544 = vmatprep.subr.bf16.mxu0 %v3006_v24  ;;  %v3022_v40 = vld [vmem:[#allocation18 + $0x70] sm:$0xff]   ;;  %v3026_v44 = vld [vmem:[#allocation18 + $0x78] sm:$0xff]   ;;  %v686_v49 = vld [vmem:[%s3702_s16 + $0x8] sm:$0xff] }
 0x1f6   : > { %2584 = vmatprep.subr.bf16.mxu1 %v3007_v25  ;;  %v3023_v41 = vld [vmem:[#allocation18 + $0xf0] sm:$0xff]   ;;  %v3027_v45 = vld [vmem:[#allocation18 + $0xf8] sm:$0xff]   ;;  %v3030_v54 = vld [vmem:[#allocation18 + $0x140] sm:$0xff]  }
 0x1f7   : > { %v3024_v42 = vld [vmem:[#allocation18 + $0x30] sm:$0xff]   ;;  %v3028_v46 = vld [vmem:[#allocation18 + $0x38] sm:$0xff]   ;;  %v3031_v57 = vld [vmem:[#allocation18 + $0x1c0] sm:$0xff]  }
 0x1f8   : > { %2545 = vmatpush3.bf16.msra.mxu0 %v3008_v26  ;;  %v3025_v43 = vld [vmem:[#allocation18 + $0xb0] sm:$0xff]   ;;  %v3029_v47 = vld [vmem:[#allocation18 + $0xb8] sm:$0xff]   ;;  %vm3715_vm2 = vmneg %vm755_vm0 }
 0x1f9   : > { %2585 = vmatpush3.bf16.msra.mxu1 %v3009_v27  ;;  %2546 = vmatprep.subr.bf16.mxu0 %v3010_v28  ;;  %v685_v48 = vld [vmem:[%s3702_s16] sm:$0xff]  ;;  %vm3729_vm3 = vmpackc.low %vm3715_vm2, %vm3715_vm2  ;;  %v3032_v13 = vld [vmem:[#allocation18 + $0x100] sm:$0xff]  }
 0x1fa   : > { %2586 = vmatprep.subr.bf16.mxu1 %v3011_v29  ;;  %v3706_v50 = vld [vmem:[#allocation7] ss:$0 sm:$0xff]  ;;  %v3710_v53 = vld [vmem:[#allocation8] ss:$0 sm:$0xff]  ;;  %vm3743_vm6 = vmpackc.low %vm3715_vm2, %vm3338_vm5 }
 0x1fb   : > { %v700_v51 = vmul.f32 %v3706_v50, %v685_v48  ;;  %v701_v52 = vmul.f32 %v3706_v50, %v686_v49  ;;  %v687_v14 = vld [vmem:[%s3702_s16 + $0x10] sm:$0xff]  ;;  %v688_v15 = vld [vmem:[%s3702_s16 + $0x18] sm:$0xff]  ;;  %v3033_v18 = vld [vmem:[#allocation18 + $0x180] sm:$0xff]  }
 0x1fc   : > { %2547 = vmatpush3.bf16.msra.mxu0 %v3012_v30  ;;  %v702_v19 = vmul.f32 %v3706_v50, %v687_v14  ;;  %v703_v20 = vmul.f32 %v3706_v50, %v688_v15  ;;  %v3034_v24 = vld [vmem:[#allocation18 + $0x148] sm:$0xff]   ;;  %v690_v48 = vld [vmem:[%s3702_s16 + $0x28] sm:$0xff]  ;;  %vm2498_vm7 = vmpackc.low %vm3338_vm5, %vm3715_vm2 }
 0x1fd   : > { %2587 = vmatpush3.bf16.msra.mxu1 %v3013_v31  ;;  %2548 = vmatprep.subr.bf16.mxu0 %v3014_v32  ;;  %v715_v55 = vadd.f32 %v3710_v53, %v700_v51  ;;  %v716_v56 = vadd.f32 %v3710_v53, %v701_v52  ;;  %v3035_v27 = vld [vmem:[#allocation18 + $0x1c8] sm:$0xff]  }
 0x1fe   : > { %2588 = vmatprep.subr.bf16.mxu1 %v3015_v33  ;;  %v717_v28 = vadd.f32 %v3710_v53, %v702_v19  ;;  %v718_v29 = vadd.f32 %v3710_v53, %v703_v20  ;;  %v3036_v30 = vld [vmem:[#allocation18 + $0x108] sm:$0xff]   ;;  %v3048_v20 = vld [vmem:[#allocation18 + $0x120] sm:$0xff]  }
 0x1ff   : > { %v723_v58 = vmax.f32 %v715_v55, 0.0  ;;  %v724_v59 = vmax.f32 %v716_v56, 0.0  ;;  %v3042_v55 = vld [vmem:[#allocation18 + $0x158] sm:$0xff]  }
 0x200   : > { %2549 = vmatpush3.bf16.msra.mxu0 %v3016_v34  ;;  %v725_v33 = vmax.f32 %v717_v28, 0.0  ;;  %v726_v34 = vmax.f32 %v718_v29, 0.0  ;;  %v3043_v56 = vld [vmem:[#allocation18 + $0x1d8] sm:$0xff]  }
 0x201   : > { %2589 = vmatpush3.bf16.msra.mxu1 %v3017_v35  ;;  %2550 = vmatprep.subr.bf16.mxu0 %v3018_v36  ;;  %v739_v61 = vrot.slane %v723_v58, 7  ;;  %v3719_v62 = vrot.slane %v724_v59, 7  ;;  %v3037_v35 = vld [vmem:[#allocation18 + $0x188] sm:$0xff]  }
 0x202   : > { %2590 = vmatprep.subr.bf16.mxu1 %v3019_v37  ;;  %v741_v36 = vrot.slane %v725_v33, 7  ;;  %v3769_v37 = vrot.slane %v726_v34, 7  ;;  %v692_v33 = vld [vmem:[%s3702_s16 + $0x38] sm:$0xff] }
 0x203   : > { %v756_v1 = vsel %vm755_vm0, 0.0, %v739_v61  ;;  %v764_v2 = vsel %vm755_vm0, %v739_v61, 0.0  ;;  %v757_v5 = vsel %vm755_vm0, 0.0, %v3719_v62  ;;  %v765_v6 = vsel %vm755_vm0, %v3719_v62, 0.0 }
 0x204   : > { %2551 = vmatpush3.bf16.msra.mxu0 %v3020_v38  ;;  %v790_v7 = vrot.slane %v756_v1, 1  ;;  %v791_v8 = vrot.slane %v764_v2, 1  ;;  %v822_v10 = vrot.slane %v756_v1, 2  ;;  %v823_v11 = vrot.slane %v764_v2, 2  ;;  %v3038_v38 = vld [vmem:[#allocation18 + $0x150] sm:$0xff]  }
 0x205   : > { %2591 = vmatpush3.bf16.msra.mxu1 %v3021_v39  ;;  %2552 = vmatprep.subr.bf16.mxu0 %v3022_v40  ;;  %v2465_v12 = vpack.c.bf16 %v3719_v62, %v739_v61  ;;  %v2445_v17 = vpack.c.bf16 %v739_v61, %v3337_v63  ;;  %v793_v21 = vrot.slane %v757_v5, 1  ;;  %v794_v25 = vrot.slane %v765_v6, 1  ;;  %v3039_v39 = vld [vmem:[#allocation18 + $0x1d0] sm:$0xff]  }
 0x206   : > { %2592 = vmatprep.subr.bf16.mxu1 %v3023_v41  ;;  %v3751_v16 = vsel %vm787_vm1, %v790_v7, %v791_v8  ;;  %v3761_v23 = vsel %vm819_vm4, %v822_v10, %v823_v11  ;;  %v825_v31 = vrot.slane %v757_v5, 2  ;;  %v826_v32 = vrot.slane %v765_v6, 2  ;;  %v3040_v41 = vld [vmem:[#allocation18 + $0x110] sm:$0xff]   ;;  %v3044_v6 = vld [vmem:[#allocation18 + $0x118] sm:$0xff]  }
 0x207   : > { %v862_v22 = vpack.c.bf16 %v3751_v16, %v3722_v0  ;;  %2466 = vmatprep.mubr.msk.bf16.mxu1 %vm3729_vm3, %v2465_v12  ;;  %v863_v26 = vpack.c.bf16 %v3761_v23, %v3734_v4  ;;  %v3772_v40 = vsel %vm787_vm1, %v793_v21, %v794_v25  ;;  %v759_v58 = vsel %vm755_vm0, 0.0, %v3769_v37  ;;  %v3045_v7 = vld [vmem:[#allocation18 + $0x198] sm:$0xff]   ;;  %v3047_v12 = vld [vmem:[#allocation18 + $0x1e0] sm:$0xff]   ;;  %v3050_v25 = vld [vmem:[#allocation18 + $0x168] sm:$0xff]  }
 0x208   : > { %2553 = vmatpush3.bf16.msra.mxu0 %v3024_v42  ;;  %v758_v42 = vsel %vm755_vm0, 0.0, %v741_v36  ;;  %v767_v59 = vsel %vm755_vm0, %v3769_v37, 0.0  ;;  %v705_v61 = vmul.f32 %v3706_v50, %v690_v48  ;;  %v3794_v2 = vpack.c.bf16 %v741_v36, %v3719_v62  ;;  %v3046_v62 = vld [vmem:[#allocation18 + $0x160] sm:$0xff]  }
 0x209   : > { %2593 = vmatpush3.bf16.msra.mxu1 %v3025_v43  ;;  %2554 = vmatprep.subr.bf16.mxu0 %v3026_v44  ;;  %v766_v43 = vsel %vm755_vm0, %v741_v36, 0.0  ;;  %v2470_v44 = vpack.c.bf16 %v3769_v37, %v741_v36  ;;  %v796_v49 = vrot.slane %v758_v42, 1  ;;  %v828_v52 = vrot.slane %v758_v42, 2 }
 0x20a   : > { %2594 = vmatprep.subr.bf16.mxu1 %v3027_v45  ;;  %1496 = vmatprep.mubr.bf16.mxu0 %v862_v22  ;;  %v3778_v45 = vsel %vm819_vm4, %v825_v31, %v826_v32  ;;  %v797_v51 = vrot.slane %v766_v43, 1  ;;  %v720_v11 = vadd.f32 %v3710_v53, %v705_v61  ;;  %v800_v14 = vrot.slane %v767_v59, 1  ;;  %v3051_v31 = vld [vmem:[#allocation18 + $0x1e8] sm:$0xff]  }
 0x20b   : > { %v832_v19 = vrot.slane %v767_v59, 2  ;;  %v691_v32 = vld [vmem:[%s3702_s16 + $0x30] sm:$0xff] }
 0x20c   : > { %2555 = vmatpush3.bf16.msra.mxu0 %v3028_v46  ;;  %v3041_v46 = vld [vmem:[#allocation18 + $0x190] sm:$0xff]   ;;  %v3791_v1 = vsel %vm787_vm1, %v796_v49, %v797_v51  ;;  %v706_v42 = vmul.f32 %v3706_v50, %v691_v32 }
 0x20d   : > { %2595 = vmatpush3.bf16.msra.mxu1 %v3029_v47  ;;  %2620 = vmatprep.subr.bf16.mxu0 %v3030_v54  ;;  %v689_v47 = vld [vmem:[%s3702_s16 + $0x20] sm:$0xff]  ;;  %v829_v54 = vrot.slane %v766_v43, 2  ;;  %v3801_v8 = vpack.c.bf16 %v3791_v1, %v3772_v40  ;;  %v3054_v51 = vld [vmem:[#allocation18 + $0x170] sm:$0xff]  }
 0x20e   : > { %2660 = vmatprep.subr.bf16.mxu1 %v3031_v57  ;;  %v704_v57 = vmul.f32 %v3706_v50, %v689_v47 }
 0x20f   : > { %2446 = vmatmul.mubr.msk.bf16.vlgmr.msra.gmra.mrb[0].mxu0 %vm3743_vm6, %v2445_v17  ;;  %v3797_v5 = vsel %vm819_vm4, %v828_v52, %v829_v54  ;;  %v728_v17 = vmax.f32 %v720_v11, 0.0 }
 0x210   : > { %1562 = vmatmul.mubr.bf16.vlgmr.msra.gmra.mrb[0].mxu1 %v863_v26  ;;  %2621 = vmatpush3.bf16.msra.mxu0 %v3032_v13  ;;  %v3805_v9 = vpack.c.bf16 %v3797_v5, %v3778_v45  ;;  %v719_v10 = vadd.f32 %v3710_v53, %v704_v57  ;;  %v799_v13 = vrot.slane %v759_v58, 1 }
 0x211   : > { %2661 = vmatpush3.bf16.msra.mxu1 %v3033_v18  ;;  %2622 = vmatprep.subr.bf16.mxu0 %v3034_v24  ;;  %v831_v18 = vrot.slane %v759_v58, 2  ;;  %v3814_v22 = vrot.slane %v728_v17, 7  ;;  %v3049_v24 = vld [vmem:[#allocation18 + $0x1a0] sm:$0xff]  }
 0x212   : > { %2662 = vmatprep.subr.bf16.mxu1 %v3035_v27  ;;  %2471 = vmatprep.mubr.msk.bf16.mxu1 %vm3729_vm3, %v2470_v44  ;;  %v727_v15 = vmax.f32 %v719_v10, 0.0  ;;  %v3817_v26 = vsel %vm787_vm1, %v799_v13, %v800_v14  ;;  %v3057_v10 = vld [vmem:[#allocation18 + $0x1b0] sm:$0xff]  }
 0x213   : > { %1504 = vmatprep.mubr.bf16.mxu0 %v3801_v8  ;;  %v761_v43 = vsel %vm755_vm0, 0.0, %v3814_v22  ;;  %v769_v44 = vsel %vm755_vm0, %v3814_v22, 0.0 }
 0x214   : > { %2623 = vmatpush3.bf16.msra.mxu0 %v3036_v30  ;;  %v743_v21 = vrot.slane %v727_v15, 7  ;;  %v3823_v30 = vsel %vm819_vm4, %v831_v18, %v832_v19  ;;  %v837_v58 = vrot.slane %v761_v43, 2  ;;  %v838_v61 = vrot.slane %v769_v44, 2 }
 0x215   : > { %2663 = vmatpush3.bf16.msra.mxu1 %v3037_v35  ;;  %2624 = vmatprep.subr.bf16.mxu0 %v3038_v38 }
 0x216   : > { %2664 = vmatprep.subr.bf16.mxu1 %v3039_v39  ;;  %v760_v27 = vsel %vm755_vm0, 0.0, %v743_v21  ;;  %v768_v28 = vsel %vm755_vm0, %v743_v21, 0.0  ;;  %v2475_v29 = vpack.c.bf16 %v3814_v22, %v743_v21  ;;  %v3052_v39 = vld [vmem:[#allocation18 + $0x128] sm:$0xff]   ;;  %v3839_v48 = vpack.c.bf16 %v743_v21, %v3769_v37  ;;  %v3061_v21 = vld [vmem:[#allocation18 + $0x1b8] sm:$0xff]  }
 0x217   : > { %2451 = vmatmul.mubr.msk.bf16.gmra.mrb[4].mxu0 %vm3729_vm3, %v3794_v2  ;;  %v802_v34 = vrot.slane %v760_v27, 1  ;;  %v803_v35 = vrot.slane %v768_v28, 1  ;;  %v834_v36 = vrot.slane %v760_v27, 2  ;;  %v835_v38 = vrot.slane %v768_v28, 2  ;;  %v3060_v27 = vld [vmem:[#allocation18 + $0x138] sm:$0xff]  }
 0x218   : > { %2625 = vmatpush3.bf16.msra.mxu0 %v3040_v41  ;;  %1570 = vmatmul.mubr.bf16.gmra.mrb[4].mxu1 %v3805_v9  ;;  %v3053_v41 = vld [vmem:[#allocation18 + $0x1a8] sm:$0xff]   ;;  %v805_v37 = vrot.slane %v761_v43, 1 }
 0x219   : > { %2665 = vmatpush3.bf16.msra.mxu1 %v3041_v46  ;;  %2626 = vmatprep.subr.bf16.mxu0 %v3042_v55  ;;  %v707_v46 = vmul.f32 %v3706_v50, %v692_v33  ;;  %v3836_v47 = vsel %vm787_vm1, %v802_v34, %v803_v35  ;;  %v3842_v49 = vsel %vm819_vm4, %v834_v36, %v835_v38  ;;  %v3055_v55 = vld [vmem:[#allocation18 + $0x1f0] sm:$0xff]   ;;  %v3062_v35 = vld [vmem:[#allocation18 + $0x200] sm:$0xff]  }
 0x21a   : > { %2666 = vmatprep.subr.bf16.mxu1 %v3043_v56  ;;  %2476 = vmatprep.mubr.msk.bf16.mxu1 %vm3729_vm3, %v2475_v29  ;;  %v3846_v52 = vpack.c.bf16 %v3836_v47, %v3817_v26  ;;  %v3850_v54 = vpack.c.bf16 %v3842_v49, %v3823_v30  ;;  %v721_v50 = vadd.f32 %v3710_v53, %v706_v42  ;;  %v806_v56 = vrot.slane %v769_v44, 1  ;;  %v3064_v36 = vld [vmem:[#allocation18 + $0x210] sm:$0xff]   ;;  %v3067_v44 = vld [vmem:[#allocation18 + $0x228] sm:$0xff]  }
 0x21b   : > { %v722_v57 = vadd.f32 %v3710_v53, %v707_v46  ;;  %v866_v33 = vpack.c.bf16 %v3778_v45, %v3761_v23  ;;  %v865_v23 = vpack.c.bf16 %v3772_v40, %v3751_v16  ;;  %v3063_v45 = vld [vmem:[#allocation18 + $0x208] sm:$0xff]   ;;  %v871_v16 = vpack.c.bf16 %v3817_v26, %v3791_v1 }
 0x21c   : > { %2627 = vmatpush3.bf16.msra.mxu0 %v3044_v6  ;;  %1512 = vmatprep.mubr.bf16.mxu0 %v3846_v52  ;;  %v729_v59 = vmax.f32 %v721_v50, 0.0  ;;  %v3056_v6 = vld [vmem:[#allocation18 + $0x130] sm:$0xff]   ;;  %v3864_v15 = vsel %vm787_vm1, %v805_v37, %v806_v56 }
 0x21d   : > { %2667 = vmatpush3.bf16.msra.mxu1 %v3045_v7  ;;  %2628 = vmatprep.subr.bf16.mxu0 %v3046_v62  ;;  %v730_v7 = vmax.f32 %v722_v57, 0.0  ;;  %v3059_v62 = vld [vmem:[#allocation18 + $0x1f8] sm:$0xff]  }
 0x21e   : > { %2668 = vmatprep.subr.bf16.mxu1 %v3047_v12  ;;  %v745_v11 = vrot.slane %v729_v59, 7  ;;  %v3058_v12 = vld [vmem:[#allocation18 + $0x178] sm:$0xff]  }
 0x21f   : > { %2456 = vmatmul.mubr.msk.bf16.gmra.mrb[8].mxu0 %vm3729_vm3, %v3839_v48  ;;  %v3859_v53 = vrot.slane %v730_v7, 7 }
 0x220   : > { %2629 = vmatpush3.bf16.msra.mxu0 %v3048_v20  ;;  %1578 = vmatmul.mubr.bf16.gmra.mrb[8].mxu1 %v3850_v54  ;;  %v762_v13 = vsel %vm755_vm0, 0.0, %v745_v11  ;;  %v770_v14 = vsel %vm755_vm0, %v745_v11, 0.0  ;;  %v2460_v29 = vpack.c.bf16 %v745_v11, %v3814_v22  ;;  %v872_v22 = vpack.c.bf16 %v3823_v30, %v3797_v5 }
 0x221   : > { %2669 = vmatpush3.bf16.msra.mxu1 %v3049_v24  ;;  %2630 = vmatprep.subr.bf16.mxu0 %v3050_v25  ;;  %v808_v17 = vrot.slane %v762_v13, 1  ;;  %v809_v18 = vrot.slane %v770_v14, 1  ;;  %v2480_v19 = vpack.c.bf16 %v3859_v53, %v745_v11  ;;  %v840_v20 = vrot.slane %v762_v13, 2 }
 0x222   : > { %2670 = vmatprep.subr.bf16.mxu1 %v3051_v31  ;;  %v839_v24 = vsel %vm819_vm4, %v837_v58, %v838_v61  ;;  %v841_v25 = vrot.slane %v770_v14, 2  ;;  %v763_v40 = vsel %vm755_vm0, 0.0, %v3859_v53  ;;  %v771_v5 = vsel %vm755_vm0, %v3859_v53, 0.0 }
 0x223   : > { %v3869_v28 = vsel %vm787_vm1, %v808_v17, %v809_v18  ;;  %2481 = vmatprep.mubr.msk.bf16.mxu1 %vm3729_vm3, %v2480_v19  ;;  %v857_v30 = vrot.slane %v763_v40, 2  ;;  %v858_v1 = vrot.slane %v771_v5, 2  ;;  %v853_v26 = vrot.slane %v763_v40, 1 }
 0x224   : > { %2631 = vmatpush3.bf16.msra.mxu0 %v3052_v39  ;;  %v880_v31 = vpack.c.bf16 %v3869_v28, %v3864_v15  ;;  %v3877_v32 = vsel %vm819_vm4, %v840_v20, %v841_v25  ;;  %v854_v38 = vrot.slane %v771_v5, 1  ;;  %v3066_v39 = vld [vmem:[#allocation18 + $0x220] sm:$0xff]  }
 0x225   : > { %2671 = vmatpush3.bf16.msra.mxu1 %v3053_v41  ;;  %2632 = vmatprep.subr.bf16.mxu0 %v3054_v51  ;;  %v3882_v34 = vpack.c.bf16 %v3877_v32, %v839_v24  ;;  %v877_v41 = vpack.c.bf16 %v3864_v15, %v3836_v47  ;;  %v859_v42 = vsel %vm819_vm4, %v857_v30, %v858_v1  ;;  %v3068_v47 = vld [vmem:[#allocation18 + $0x230] sm:$0xff]  }
 0x226   : > { %2672 = vmatprep.subr.bf16.mxu1 %v3055_v55  ;;  %1520 = vmatprep.mubr.bf16.mxu0 %v880_v31  ;;  %v855_v43 = vsel %vm787_vm1, %v853_v26, %v854_v38  ;;  %v884_v46 = vpack.c.bf16 %v859_v42, %v3877_v32  ;;  %v2499_v51 = vpack.c.bf16 %v3337_v63, %v3859_v53 }
 0x227   : > { %2461 = vmatmul.mubr.msk.bf16.gmra.mrb[12].mxu0 %vm3729_vm3, %v2460_v29  ;;  %v887_v63 = vpack.c.bf16 %v3734_v4, %v859_v42 }
 0x228   : > { %2633 = vmatpush3.bf16.msra.mxu0 %v3056_v6  ;;  %1586 = vmatmul.mubr.bf16.gmra.mrb[12].mxu1 %v3882_v34 }
 0x229   : > { %2673 = vmatpush3.bf16.msra.mxu1 %v3057_v10  ;;  %2634 = vmatprep.subr.bf16.mxu0 %v3058_v12 }
 0x22a   : > { %2674 = vmatprep.subr.bf16.mxu1 %v3059_v62  ;;  %1626 = vmatprep.mubr.bf16.mxu0 %v866_v33 }
 0x22b   : > { %1691 = vmatprep.mubr.bf16.mxu1 %v3801_v8  ;;  %v878_v8 = vpack.c.bf16 %v839_v24, %v3842_v49  ;;  %v883_v49 = vpack.c.bf16 %v855_v43, %v3869_v28 }
 0x22c   : > { %2635 = vmatpush3.bf16.msra.mxu0 %v3060_v27 }
 0x22d   : > { %2675 = vmatpush3.bf16.msra.mxu1 %v3061_v21  ;;  %2748 = vmatprep.subr.bf16.mxu0 %v3062_v35 }
 0x22e   : > { %2812 = vmatprep.subr.bf16.mxu1 %v3062_v35 }
 0x22f   : > { %1627 = vmatmul.mubr.bf16.vlgmr.msra.gmra.mrb[16].mxu0 %v865_v23 }
 0x230   : > { %2486 = vmatmul.mubr.msk.bf16.vlgmr.msra.gmra.mrb[16].mxu1 %vm3729_vm3, %v3794_v2  ;;  %2749 = vmatpush3.bf16.msra.mxu0 %v3062_v35  ;;  %v3065_v2 = vld [vmem:[#allocation18 + $0x218] sm:$0xff]  }
 0x231   : > { %2820 = vmatpush3.bf16.msra.mxu1 %v3062_v35  ;;  %2750 = vmatprep.subr.bf16.mxu0 %v3063_v45 }
 0x232   : > { %2813 = vmatprep.subr.bf16.mxu1 %v3063_v45  ;;  %1634 = vmatprep.mubr.bf16.mxu0 %v872_v22 }
 0x233   : > { %1699 = vmatprep.mubr.bf16.mxu1 %v3846_v52 }
 0x234   : > { %2751 = vmatpush3.bf16.msra.mxu0 %v3063_v45 }
 0x235   : > { %2821 = vmatpush3.bf16.msra.mxu1 %v3063_v45  ;;  %2752 = vmatprep.subr.bf16.mxu0 %v3064_v36 }
 0x236   : > { %2814 = vmatprep.subr.bf16.mxu1 %v3064_v36 }
 0x237   : > { %1635 = vmatmul.mubr.bf16.gmra.mrb[20].mxu0 %v871_v16 }
 0x238   : > { %2491 = vmatmul.mubr.msk.bf16.gmra.mrb[20].mxu1 %vm3729_vm3, %v3839_v48  ;;  %2753 = vmatpush3.bf16.msra.mxu0 %v3064_v36  ;;  %v886_v48 = vpack.c.bf16 %v3722_v0, %v855_v43  ;;  %v3069_v0 = vld [vmem:[#allocation18 + $0x238] sm:$0xff]  }
 0x239   : > { %2822 = vmatpush3.bf16.msra.mxu1 %v3064_v36  ;;  %2754 = vmatprep.subr.bf16.mxu0 %v3065_v2 }
 0x23a   : > { %2815 = vmatprep.subr.bf16.mxu1 %v3065_v2  ;;  %1642 = vmatprep.mubr.bf16.mxu0 %v878_v8 }
 0x23b   : > { %1707 = vmatprep.mubr.bf16.mxu1 %v880_v31 }
 0x23c   : > { %2755 = vmatpush3.bf16.msra.mxu0 %v3065_v2 }
 0x23d   : > { %2823 = vmatpush3.bf16.msra.mxu1 %v3065_v2  ;;  %2756 = vmatprep.subr.bf16.mxu0 %v3066_v39 }
 0x23e   : > { %2816 = vmatprep.subr.bf16.mxu1 %v3066_v39 }
 0x23f   : > { %1643 = vmatmul.mubr.bf16.gmra.mrb[24].mxu0 %v877_v41 }
 0x240   : > { %2496 = vmatmul.mubr.msk.bf16.gmra.mrb[24].mxu1 %vm3729_vm3, %v2460_v29  ;;  %2757 = vmatpush3.bf16.msra.mxu0 %v3066_v39 }
 0x241   : > { %2824 = vmatpush3.bf16.msra.mxu1 %v3066_v39  ;;  %2758 = vmatprep.subr.bf16.mxu0 %v3067_v44 }
 0x242   : > { %2817 = vmatprep.subr.bf16.mxu1 %v3067_v44  ;;  %1650 = vmatprep.mubr.bf16.mxu0 %v884_v46 }
 0x243   : > { %1715 = vmatprep.mubr.bf16.mxu1 %v886_v48 }
 0x244   : > { %2759 = vmatpush3.bf16.msra.mxu0 %v3067_v44 }
 0x245   : > { %2825 = vmatpush3.bf16.msra.mxu1 %v3067_v44  ;;  %2760 = vmatprep.subr.bf16.mxu0 %v3068_v47 }
 0x246   : > { %2818 = vmatprep.subr.bf16.mxu1 %v3068_v47 }
 0x247   : > { %1651 = vmatmul.mubr.bf16.gmra.mrb[28].mxu0 %v883_v49 }
 0x248   : > { %2500 = vmatmul.mubr.msk.bf16.gmra.mrb[28].mxu1 %vm2498_vm7, %v2499_v51  ;;  %2761 = vmatpush3.bf16.msra.mxu0 %v3068_v47 }
 0x249   : > { %2826 = vmatpush3.bf16.msra.mxu1 %v3068_v47  ;;  %2762 = vmatprep.subr.bf16.mxu0 %v3069_v0 }
 0x24a   : > { %2819 = vmatprep.subr.bf16.mxu1 %v3069_v0  ;;  %2764 = vmatprep.mubr.bf16.mxu0 %v3805_v9 }
 0x24b   : > { %2768 = vmatprep.mubr.bf16.mxu1 %v3882_v34 }
 0x24c   : > { %2763 = vmatpush3.bf16.msra.mxu0 %v3069_v0 }
 0x24d   : > { %2827 = vmatpush3.bf16.msra.mxu1 %v3069_v0 }
 0x24f   : > { %2765 = vmatmul.mubr.bf16.vlgmr.msra.gmra.mrb[32].mxu0 %v3850_v54 }
 0x250   : > { %2769 = vmatmul.mubr.bf16.vlgmr.msra.gmra.mrb[32].mxu1 %v887_v63 }
 0x2e2   : > { %v2556_v60 = vpop.f32.mrb[0].mxu0 }
 0x2e3   : > { %v2596_v3 = vpop.f32.mrb[0].mxu1  ;;  %v2557_v52 = vpop.f32.mrb[1].mxu0 }
 0x2e4   : > { %v2597_v50 = vpop.f32.mrb[1].mxu1  ;;  %v2558_v37 = vadd.f32 %v2557_v52, %v2556_v60  ;;  %v2559_v56 = vpop.f32.mrb[2].mxu0 }
 0x2e5   : > { %v2598_v55 = vadd.f32 %v2597_v50, %v2596_v3  ;;  %v2599_v57 = vpop.f32.mrb[2].mxu1  ;;  %v2560_v58 = vpop.f32.mrb[3].mxu0 }
 0x2e6   : > { %v2600_v59 = vpop.f32.mrb[3].mxu1  ;;  %v2561_v61 = vadd.f32 %v2560_v58, %v2559_v56 }
 0x2e7   : > { %v1564_v9 = vadd.f32 %v2598_v55, %v2558_v37  ;;  %v2601_v6 = vadd.f32 %v2600_v59, %v2599_v57 }
 0x2e9   : > { %v1567_v7 = vadd.f32 %v2601_v6, %v2561_v61 }
 0x2ea   : > { %v2562_v10 = vpop.f32.mrb[4].mxu0 }
 0x2eb   : > { %v2602_v4 = vpop.f32.mrb[4].mxu1  ;;  %v2563_v62 = vpop.f32.mrb[5].mxu0 }
 0x2ec   : > { %v2603_v11 = vpop.f32.mrb[5].mxu1  ;;  %v2564_v12 = vadd.f32 %v2563_v62, %v2562_v10  ;;  %v2565_v13 = vpop.f32.mrb[6].mxu0 }
 0x2ed   : > { %v2604_v54 = vadd.f32 %v2603_v11, %v2602_v4  ;;  %v2605_v53 = vpop.f32.mrb[6].mxu1  ;;  %v2566_v15 = vpop.f32.mrb[7].mxu0 }
 0x2ee   : > { %v2606_v14 = vpop.f32.mrb[7].mxu1  ;;  %v2567_v19 = vadd.f32 %v2566_v15, %v2565_v13 }
 0x2ef   : > { %v2607_v17 = vadd.f32 %v2606_v14, %v2605_v53  ;;  %v1572_v18 = vadd.f32 %v2604_v54, %v2564_v12 }
 0x2f1   : > { %v1575_v20 = vadd.f32 %v2607_v17, %v2567_v19 }
 0x2f2   : > { %v2568_v24 = vpop.f32.mrb[8].mxu0 }
 0x2f3   : > { %v2608_v21 = vpop.f32.mrb[8].mxu1  ;;  %v2569_v27 = vpop.f32.mrb[9].mxu0 }
 0x2f4   : > { %v2609_v25 = vpop.f32.mrb[9].mxu1  ;;  %v2570_v31 = vadd.f32 %v2569_v27, %v2568_v24  ;;  %v2571_v32 = vpop.f32.mrb[10].mxu0 }
 0x2f5   : > { %v2610_v28 = vadd.f32 %v2609_v25, %v2608_v21  ;;  %v2611_v29 = vpop.f32.mrb[10].mxu1  ;;  %v2572_v34 = vpop.f32.mrb[11].mxu0 }
 0x2f6   : > { %v2612_v33 = vpop.f32.mrb[11].mxu1  ;;  %v2573_v45 = vadd.f32 %v2572_v34, %v2571_v32 }
 0x2f7   : > { %v2613_v35 = vadd.f32 %v2612_v33, %v2611_v29  ;;  %v1580_v23 = vadd.f32 %v2610_v28, %v2570_v31 }
 0x2f9   : > { %v1583_v22 = vadd.f32 %v2613_v35, %v2573_v45 }
 0x2fa   : > { %v2574_v36 = vpop.f32.mrb[12].mxu0 }
 0x2fb   : > { %v2614_v16 = vpop.f32.mrb[12].mxu1  ;;  %v2575_v40 = vpop.f32.mrb[13].mxu0 }
 0x2fc   : > { %v2615_v5 = vpop.f32.mrb[13].mxu1  ;;  %v2576_v2 = vadd.f32 %v2575_v40, %v2574_v36  ;;  %v2577_v30 = vpop.f32.mrb[14].mxu0 }
 0x2fd   : > { %v2616_v8 = vadd.f32 %v2615_v5, %v2614_v16  ;;  %v2617_v1 = vpop.f32.mrb[14].mxu1  ;;  %v2578_v26 = vpop.f32.mrb[15].mxu0 }
 0x2fe   : > { %v2618_v38 = vpop.f32.mrb[15].mxu1  ;;  %v2579_v41 = vadd.f32 %v2578_v26, %v2577_v30 }
 0x2ff   : > { %v1588_v39 = vadd.f32 %v2616_v8, %v2576_v2  ;;  %v2619_v42 = vadd.f32 %v2618_v38, %v2617_v1 }
 0x301   : > { %v1591_v43 = vadd.f32 %v2619_v42, %v2579_v41 }
 0x302   : > { %v2636_v44 = vpop.f32.mrb[16].mxu0 }
 0x303   : > { %v2676_v46 = vpop.f32.mrb[16].mxu1  ;;  %v2637_v48 = vpop.f32.mrb[17].mxu0 }
 0x304   : > { %v2677_v47 = vpop.f32.mrb[17].mxu1  ;;  %v2638_v49 = vadd.f32 %v2637_v48, %v2636_v44  ;;  %v2639_v0 = vpop.f32.mrb[18].mxu0 }
 0x305   : > { %v2678_v51 = vadd.f32 %v2677_v47, %v2676_v46  ;;  %v2679_v63 = vpop.f32.mrb[18].mxu1  ;;  %v2640_v60 = vpop.f32.mrb[19].mxu0 }
 0x306   : > { %v2680_v3 = vpop.f32.mrb[19].mxu1  ;;  %v1629_v52 = vadd.f32 %v2638_v49, %v1564_v9  ;;  %v2641_v50 = vadd.f32 %v2640_v60, %v2639_v0 }
 0x307   : > { %v2681_v37 = vadd.f32 %v2680_v3, %v2679_v63 }
 0x308   : > { %v1632_v55 = vadd.f32 %v2641_v50, %v1567_v7  ;;  %v1694_v56 = vadd.f32 %v2678_v51, %v1629_v52 }
 0x30a   : > { %v2642_v57 = vpop.f32.mrb[20].mxu0  ;;  %v1697_v59 = vadd.f32 %v2681_v37, %v1632_v55 }
 0x30b   : > { %v2682_v58 = vpop.f32.mrb[20].mxu1  ;;  %v2643_v61 = vpop.f32.mrb[21].mxu0 }
 0x30c   : > { %v2683_v6 = vpop.f32.mrb[21].mxu1  ;;  %v2644_v4 = vadd.f32 %v2643_v61, %v2642_v57  ;;  %v2645_v11 = vpop.f32.mrb[22].mxu0 }
 0x30d   : > { %v2684_v10 = vadd.f32 %v2683_v6, %v2682_v58  ;;  %v2685_v62 = vpop.f32.mrb[22].mxu1  ;;  %v2646_v54 = vpop.f32.mrb[23].mxu0 }
 0x30e   : > { %v2686_v53 = vpop.f32.mrb[23].mxu1  ;;  %v1637_v12 = vadd.f32 %v2644_v4, %v1572_v18  ;;  %v2647_v13 = vadd.f32 %v2646_v54, %v2645_v11 }
 0x30f   : > { %v2687_v14 = vadd.f32 %v2686_v53, %v2685_v62 }
 0x310   : > { %v1640_v15 = vadd.f32 %v2647_v13, %v1575_v20  ;;  %v1702_v9 = vadd.f32 %v2684_v10, %v1637_v12 }
 0x312   : > { %v2648_v17 = vpop.f32.mrb[24].mxu0  ;;  %v1705_v7 = vadd.f32 %v2687_v14, %v1640_v15 }
 0x313   : > { %v2688_v19 = vpop.f32.mrb[24].mxu1  ;;  %v2649_v21 = vpop.f32.mrb[25].mxu0 }
 0x314   : > { %v2689_v24 = vpop.f32.mrb[25].mxu1  ;;  %v2650_v25 = vadd.f32 %v2649_v21, %v2648_v17  ;;  %v2651_v28 = vpop.f32.mrb[26].mxu0 }
 0x315   : > { %v2690_v27 = vadd.f32 %v2689_v24, %v2688_v19  ;;  %v2691_v29 = vpop.f32.mrb[26].mxu1  ;;  %v2652_v31 = vpop.f32.mrb[27].mxu0 }
 0x316   : > { %v2692_v32 = vpop.f32.mrb[27].mxu1  ;;  %v1645_v33 = vadd.f32 %v2650_v25, %v1580_v23  ;;  %v2653_v34 = vadd.f32 %v2652_v31, %v2651_v28 }
 0x317   : > { %v2693_v35 = vadd.f32 %v2692_v32, %v2691_v29 }
 0x318   : > { %v1648_v45 = vadd.f32 %v2653_v34, %v1583_v22  ;;  %v1710_v18 = vadd.f32 %v2690_v27, %v1645_v33 }
 0x31a   : > { %v2654_v36 = vpop.f32.mrb[28].mxu0  ;;  %v1713_v20 = vadd.f32 %v2693_v35, %v1648_v45 }
 0x31b   : > { %v2694_v16 = vpop.f32.mrb[28].mxu1  ;;  %v2655_v40 = vpop.f32.mrb[29].mxu0 }
 0x31c   : > { %v2695_v5 = vpop.f32.mrb[29].mxu1  ;;  %v2656_v2 = vadd.f32 %v2655_v40, %v2654_v36  ;;  %v2657_v30 = vpop.f32.mrb[30].mxu0 }
 0x31d   : > { %v2696_v8 = vadd.f32 %v2695_v5, %v2694_v16  ;;  %v2697_v1 = vpop.f32.mrb[30].mxu1  ;;  %v2658_v26 = vpop.f32.mrb[31].mxu0 }
 0x31e   : > { %v2698_v38 = vpop.f32.mrb[31].mxu1  ;;  %v1653_v41 = vadd.f32 %v2656_v2, %v1588_v39  ;;  %v2659_v42 = vadd.f32 %v2658_v26, %v2657_v30 }
 0x31f   : > { %v2699_v44 = vadd.f32 %v2698_v38, %v2697_v1 }
 0x320   : > { %v1656_v46 = vadd.f32 %v2659_v42, %v1591_v43  ;;  %v1718_v23 = vadd.f32 %v2696_v8, %v1653_v41  ;;  %v3339_v43 = vmov (!%p2501_p4), 0.0  }
 0x321   : > { %1792 = sbr.rel (%p2501_p4) target bundleno = 808 (0x328), region = 96  ;;  %1793 = vst [vmem:[#allocation5] sm:$0x1] (!%p2501_p4), %v3339_v43  ;;  %1794 = vst [vmem:[#allocation6] sm:$0x1] (!%p2501_p4), %v3339_v43 }
 0x322   : > { %v2766_v48 = vpop.f32.mrb[32].mxu0  ;;  %v1721_v22 = vadd.f32 %v2699_v44, %v1656_v46 }
 0x323   : > { %v2770_v47 = vpop.f32.mrb[32].mxu1  ;;  %v1767_v49 = vadd.f32 %v2766_v48, %v1702_v9  ;;  %v1758_v0 = vpop.f32.mrb[33].mxu0 }
 0x324   : > { %v1783_v51 = vadd.f32 %v2770_v47, %v1718_v23  ;;  %v1774_v63 = vpop.f32.mrb[33].mxu1  ;;  %v1759_v60 = vadd.f32 %v1758_v0, %v1694_v56  ;;  %v2767_v52 = vpop.f32.mrb[34].mxu0 }
 0x325   : > { %v1775_v3 = vadd.f32 %v1774_v63, %v1710_v18  ;;  %v2771_v50 = vpop.f32.mrb[34].mxu1  ;;  %v1770_v37 = vadd.f32 %v2767_v52, %v1705_v7  ;;  %v1761_v57 = vpop.f32.mrb[35].mxu0 }
 0x326   : > { %v1786_v55 = vadd.f32 %v2771_v50, %v1721_v22  ;;  %v1777_v58 = vpop.f32.mrb[35].mxu1  ;;  %v1762_v39 = vadd.f32 %v1761_v57, %v1697_v59 }
 0x327   : > { %v1778_v61 = vadd.f32 %v1777_v58, %v1713_v20 }
 0x328 PF: > { %v1796_v6 = vadd.f32 %v1762_v39, %v1759_v60  ;;  %s4110_s4 = sld [smem:[#allocation27_spill]]  ;;  %v1812_v4 = vmul.f32 %v1759_v60, %v1759_v60  ;;  %v1813_v56 = vmul.f32 %v1762_v39, %v1762_v39  ;;  %v1814_v10 = vmul.f32 %v1767_v49, %v1767_v49  ;;  %s1835_s6 = scalar_lea.vmem [#allocation3], %s2368_s30  ;;  %v1795_v16 = vld [vmem:[#allocation5] sm:$0x1]  ;;  %v1811_v5 = vld [vmem:[#allocation6] sm:$0x1] }
 0x329   : > { %1836 = vst [vmem:[%s1835_s6] sm:$0xff] %v1759_v60  ;;  %1837 = vst [vmem:[%s1835_s6 + $0x8] sm:$0xff] %v1762_v39  ;;  %v1815_v11 = vmul.f32 %v1770_v37, %v1770_v37  ;;  %v1816_v53 = vmul.f32 %v1775_v3, %v1775_v3  ;;  %v1817_v14 = vmul.f32 %v1778_v61, %v1778_v61 }
 0x32a   : > { %1838 = vst [vmem:[%s1835_s6 + $0x10] sm:$0xff] %v1767_v49  ;;  %1839 = vst [vmem:[%s1835_s6 + $0x18] sm:$0xff] %v1770_v37  ;;  %v1797_v59 = vadd.f32 %v1796_v6, %v1767_v49  ;;  %v1820_v62 = vadd.f32 %v1813_v56, %v1812_v4  ;;  %v1818_v17 = vmul.f32 %v1783_v51, %v1783_v51 }
 0x32b   : > { %1840 = vst [vmem:[%s1835_s6 + $0x20] sm:$0xff] %v1775_v3  ;;  %1841 = vst [vmem:[%s1835_s6 + $0x28] sm:$0xff] %v1778_v61  ;;  %v1819_v21 = vmul.f32 %v1786_v55, %v1786_v55 }
 0x32c   : > { %1842 = vst [vmem:[%s1835_s6 + $0x30] sm:$0xff] %v1783_v51  ;;  %1843 = vst [vmem:[%s1835_s6 + $0x38] sm:$0xff] %v1786_v55  ;;  %v1798_v54 = vadd.f32 %v1797_v59, %v1770_v37  ;;  %v1821_v12 = vadd.f32 %v1820_v62, %v1814_v10 }
 0x32e   : > { %v1799_v13 = vadd.f32 %v1798_v54, %v1775_v3  ;;  %v1822_v15 = vadd.f32 %v1821_v12, %v1815_v11  ;;  %p2502_p1 = scmp.ne.s32.totalorder %s4110_s4, 1 }
 0x32f   : > { %s4111_s26 = sld [smem:[#allocation37_spill]] (!%p2502_p1)  ;;  %s4112_s1 = sld [smem:[#allocation38_spill]] (!%p2502_p1) }
 0x330   : > { %v1800_v9 = vadd.f32 %v1799_v13, %v1778_v61  ;;  %v1823_v19 = vadd.f32 %v1822_v15, %v1816_v53 }
 0x332   : > { %v1801_v7 = vadd.f32 %v1800_v9, %v1783_v51  ;;  %v1824_v24 = vadd.f32 %v1823_v19, %v1817_v14 }
 0x334   : > { %v1802_v25 = vadd.f32 %v1801_v7, %v1786_v55  ;;  %v1825_v27 = vadd.f32 %v1824_v24, %v1818_v17 }
 0x335   : > { %v1854_v23 = vld [vmem:[%s4111_s26] sm:$0x1] (!%p2502_p1) }
 0x336   : > { %v1803_v28 = vrot.slane %v1802_v25, 4  ;;  %v1826_v29 = vadd.f32 %v1825_v27, %v1819_v21  ;;  %v1859_v22 = vld [vmem:[%s4112_s1] sm:$0x1] (!%p2502_p1) }
 0x338   : > { %v1804_v31 = vadd.f32 %v1803_v28, %v1802_v25  ;;  %v1827_v32 = vrot.slane %v1826_v29, 4 }
 0x33a   : > { %v1805_v33 = vrot.slane %v1804_v31, 2  ;;  %v1828_v34 = vadd.f32 %v1827_v32, %v1826_v29 }
 0x33c   : > { %v1806_v35 = vadd.f32 %v1805_v33, %v1804_v31  ;;  %v1829_v45 = vrot.slane %v1828_v34, 2 }
 0x33e   : > { %v1807_v18 = vrot.slane %v1806_v35, 1  ;;  %v1830_v36 = vadd.f32 %v1829_v45, %v1828_v34 }
 0x340   : > { %v1808_v20 = vadd.f32 %v1807_v18, %v1806_v35  ;;  %v1831_v40 = vrot.slane %v1830_v36, 1  ;;  %1847 = sbr.rel (%p2502_p1) target bundleno = 870 (0x366), region = 100 }
 0x342   : > { %v1809_v2 = vadd.f32 %v1808_v20, %v1795_v16  ;;  %v1832_v8 = vadd.f32 %v1831_v40, %v1830_v36 }
 0x344   : > { %1810 = vst [vmem:[#allocation5] sm:$0x1] %v1809_v2  ;;  %v1833_v30 = vadd.f32 %v1832_v8, %v1811_v5 }
 0x346   : > { %1834 = vst [vmem:[#allocation6] sm:$0x1] %v1833_v30 }
 0x34b   : > { %v1848_v1 = vld [vmem:[#allocation5] sm:$0x1] }
 0x34c   : > { %v1849_v38 = vmul.f32 0.0078125, %v1848_v1 }
 0x34d   : > { %v1850_v26 = vld [vmem:[#allocation6] sm:$0x1] }
 0x34e   : > { %v1851_v41 = vmul.f32 0.0078125, %v1850_v26  ;;  %v1852_v42 = vmul.f32 %v1849_v38, %v1849_v38 }
 0x350   : > { %v1853_v44 = vsub.f32 %v1851_v41, %v1852_v42 }
 0x352   : > { %v1855_v46 = vadd.f32 1e-05, %v1853_v44 }
 0x354   : > { %3070 = vrsqrt.f32 %v1855_v46 }
 0x35e   : > { %v3071_v48 = vpop.eup %3070 }
 0x35f   : > { %v1857_v47 = vmul.f32 %v3071_v48, %v1854_v23 }
 0x361   : > { %1858 = vst [vmem:[#allocation9] sm:$0x1] %v1857_v47  ;;  %v1860_v49 = vmul.f32 %v1857_v47, %v1849_v38 }
 0x363   : > { %v1861_v51 = vsub.f32 %v1859_v22, %v1860_v49 }
 0x365   : > { %1862 = vst [vmem:[#allocation10] sm:$0x1] %v1861_v51 }
 0x366 PF: > { %p2503_p7 = scmp.ne.s32.totalorder %s3314_s20, 2 }
 0x367   : > { %v3072_v0 = vld [vmem:[#allocation19] sm:$0xff] (!%p2503_p7)   ;;  %s4113_s13 = sld [smem:[#allocation27_spill]] (!%p2503_p7)  ;;  %v3073_v63 = vld [vmem:[#allocation19 + $0x8] sm:$0xff] (!%p2503_p7)   ;;  %v3074_v60 = vld [vmem:[#allocation19 + $0x10] sm:$0xff] (!%p2503_p7)  }
 0x368   : > { %1866 = sbr.rel (%p2503_p7) target bundleno = 1182 (0x49e), region = 104  ;;  %2772 = vmatprep.subr.bf16.mxu0 (!%p2503_p7), %v3072_v0  ;;  %2828 = vmatprep.subr.bf16.mxu1 (!%p2503_p7), %v3072_v0  ;;  %v3075_v3 = vld [vmem:[#allocation19 + $0x18] sm:$0xff] (!%p2503_p7)   ;;  %v3076_v10 = vld [vmem:[#allocation19 + $0x20] sm:$0xff] (!%p2503_p7)   ;;  %v3077_v19 = vld [vmem:[#allocation19 + $0x28] sm:$0xff] (!%p2503_p7)  }
 0x369   : > { %2773 = vmatpush3.bf16.msra.mxu0 (!%p2503_p7), %v3072_v0  ;;  %2836 = vmatpush3.bf16.msra.mxu1 (!%p2503_p7), %v3072_v0  ;;  %v2505_v37 = vld [vmem:[#allocation9] ss:$0 sm:$0xff] (!%p2503_p7)  ;;  %v3078_v28 = vld [vmem:[#allocation19 + $0x30] sm:$0xff] (!%p2503_p7)  }
 0x36a   : > { %2774 = vmatprep.subr.bf16.mxu0 (!%p2503_p7), %v3073_v63  ;;  %2829 = vmatprep.subr.bf16.mxu1 (!%p2503_p7), %v3073_v63  ;;  %v3079_v34 = vld [vmem:[#allocation19 + $0x38] sm:$0xff] (!%p2503_p7)  }
 0x36c   : > { %v2506_v58 = vld [vmem:[#allocation10] ss:$0 sm:$0xff] (!%p2503_p7) }
 0x36d   : > { %s2504_s10 = sshll.u32 (!%p2503_p7), %s4113_s13, 6  ;;  %2775 = vmatpush3.bf16.msra.mxu0 (!%p2503_p7), %v3073_v63  ;;  %2837 = vmatpush3.bf16.msra.mxu1 (!%p2503_p7), %v3073_v63  ;;  %p2515_p11 = scmp.ne.s32.totalorder (!%p2503_p7), %s4113_s13, 0 }
 0x36e   : > { %2776 = vmatprep.subr.bf16.mxu0 (!%p2503_p7), %v3074_v60  ;;  %2830 = vmatprep.subr.bf16.mxu1 (!%p2503_p7), %v3074_v60  ;;  %s1868_s19 = scalar_lea.vmem (!%p2503_p7), [#allocation3], %s2504_s10 }
 0x36f   : > { %v1869_v52 = vld [vmem:[%s1868_s19] sm:$0xff]  ;;  %v1870_v50 = vld [vmem:[%s1868_s19 + $0x8] sm:$0xff]  ;;  %v1871_v13 = vld [vmem:[%s1868_s19 + $0x10] sm:$0xff]  ;;  %v3340_v41 = vmov (!%p2515_p11), 0.0  }
 0x370   : > { %v1884_v55 = vmul.f32 %v2505_v37, %v1869_v52  ;;  %v1885_v57 = vmul.f32 %v2505_v37, %v1870_v50  ;;  %v1873_v39 = vld [vmem:[%s1868_s19 + $0x20] sm:$0xff]  ;;  %v1874_v61 = vld [vmem:[%s1868_s19 + $0x28] sm:$0xff]  ;;  %v1872_v15 = vld [vmem:[%s1868_s19 + $0x18] sm:$0xff]  ;;  %v1886_v21 = vmul.f32 %v2505_v37, %v1871_v13  ;;  %2052 = vst [vmem:[#allocation5] sm:$0x1] (!%p2515_p11), %v3340_v41 }
 0x371   : > { %v1888_v43 = vmul.f32 %v2505_v37, %v1873_v39  ;;  %v1889_v6 = vmul.f32 %v2505_v37, %v1874_v61  ;;  %2777 = vmatpush3.bf16.msra.mxu0 %v3074_v60  ;;  %2838 = vmatpush3.bf16.msra.mxu1 %v3074_v60  ;;  %v1875_v9 = vld [vmem:[%s1868_s19 + $0x30] sm:$0xff]  ;;  %v1876_v17 = vld [vmem:[%s1868_s19 + $0x38] sm:$0xff]  ;;  %v1887_v24 = vmul.f32 %v2505_v37, %v1872_v15 }
 0x372   : > { %v1899_v4 = vadd.f32 %v2506_v58, %v1884_v55  ;;  %v1900_v56 = vadd.f32 %v2506_v58, %v1885_v57  ;;  %2778 = vmatprep.subr.bf16.mxu0 %v3075_v3  ;;  %2831 = vmatprep.subr.bf16.mxu1 %v3075_v3  ;;  %v1890_v25 = vmul.f32 %v2505_v37, %v1875_v9 }
 0x373   : > { %v1903_v59 = vadd.f32 %v2506_v58, %v1888_v43  ;;  %v1904_v11 = vadd.f32 %v2506_v58, %v1889_v6  ;;  %v1891_v27 = vmul.f32 %v2505_v37, %v1876_v17  ;;  %v1901_v29 = vadd.f32 %v2506_v58, %v1886_v21  ;;  %2053 = vst [vmem:[#allocation6] sm:$0x1] (!%p2515_p11), %v3340_v41 }
 0x374   : > { %v1907_v62 = vmax.f32 %v1899_v4, 0.0  ;;  %v1908_v54 = vmax.f32 %v1900_v56, 0.0  ;;  %v1902_v31 = vadd.f32 %v2506_v58, %v1887_v24  ;;  %v1905_v32 = vadd.f32 %v2506_v58, %v1890_v25 }
 0x375   : > { %v1911_v53 = vmax.f32 %v1903_v59, 0.0  ;;  %v1912_v12 = vmax.f32 %v1904_v11, 0.0  ;;  %2779 = vmatpush3.bf16.msra.mxu0 %v3075_v3  ;;  %2839 = vmatpush3.bf16.msra.mxu1 %v3075_v3  ;;  %v1906_v33 = vadd.f32 %v2506_v58, %v1891_v27  ;;  %v1909_v35 = vmax.f32 %v1901_v29, 0.0 }
 0x376   : > { %v1915_v14 = vpack.c.bf16 %v1908_v54, %v1907_v62  ;;  %2780 = vmatprep.subr.bf16.mxu0 %v3076_v10  ;;  %2832 = vmatprep.subr.bf16.mxu1 %v3076_v10  ;;  %v1910_v45 = vmax.f32 %v1902_v31, 0.0  ;;  %v1913_v18 = vmax.f32 %v1905_v32, 0.0 }
 0x377   : > { %v1917_v7 = vpack.c.bf16 %v1912_v12, %v1911_v53  ;;  %v1914_v36 = vmax.f32 %v1906_v33, 0.0 }
 0x378   : > { %2788 = vmatprep.mubr.bf16.mxu0 %v1915_v14  ;;  %v1916_v16 = vpack.c.bf16 %v1910_v45, %v1909_v35 }
 0x379   : > { %2792 = vmatprep.mubr.bf16.mxu1 %v1917_v7  ;;  %2781 = vmatpush3.bf16.msra.mxu0 %v3076_v10  ;;  %v1918_v20 = vpack.c.bf16 %v1914_v36, %v1913_v18 }
 0x37a   : > { %2840 = vmatpush3.bf16.msra.mxu1 %v3076_v10  ;;  %2782 = vmatprep.subr.bf16.mxu0 %v3077_v19 }
 0x37b   : > { %2833 = vmatprep.subr.bf16.mxu1 %v3077_v19 }
 0x37d   : > { %2783 = vmatpush3.bf16.msra.mxu0 %v3077_v19 }
 0x37e   : > { %2841 = vmatpush3.bf16.msra.mxu1 %v3077_v19  ;;  %2784 = vmatprep.subr.bf16.mxu0 %v3078_v28 }
 0x37f   : > { %2834 = vmatprep.subr.bf16.mxu1 %v3078_v28 }
 0x381   : > { %2785 = vmatpush3.bf16.msra.mxu0 %v3078_v28 }
 0x382   : > { %2842 = vmatpush3.bf16.msra.mxu1 %v3078_v28  ;;  %2786 = vmatprep.subr.bf16.mxu0 %v3079_v34 }
 0x383   : > { %2835 = vmatprep.subr.bf16.mxu1 %v3079_v34 }
 0x385   : > { %2787 = vmatpush3.bf16.msra.mxu0 %v3079_v34 }
 0x386   : > { %2843 = vmatpush3.bf16.msra.mxu1 %v3079_v34 }
 0x388   : > { %2789 = vmatmul.mubr.bf16.vlgmr.msra.gmra.mrb[0].mxu0 %v1916_v16 }
 0x389   : > { %2793 = vmatmul.mubr.bf16.vlgmr.msra.gmra.mrb[0].mxu1 %v1918_v20 }
 0x459   : > { %2051 = sbr.rel (%p2515_p11) target bundleno = 1120 (0x460), region = 108 }
 0x45b   : > { %v2790_v40 = vpop.f32.mrb[0].mxu0 }
 0x45c   : > { %v2794_v5 = vpop.f32.mrb[0].mxu1  ;;  %v2017_v2 = vpop.f32.mrb[1].mxu0 }
 0x45d   : > { %v2033_v8 = vpop.f32.mrb[1].mxu1  ;;  %v2791_v30 = vpop.f32.mrb[2].mxu0 }
 0x45e   : > { %v2795_v1 = vpop.f32.mrb[2].mxu1  ;;  %v2020_v26 = vpop.f32.mrb[3].mxu0 }
 0x45f   : > { %v2036_v38 = vpop.f32.mrb[3].mxu1 }
 0x460 PF: > { %v2055_v42 = vadd.f32 %v2020_v26, %v2017_v2  ;;  %s4114_s9 = sld [smem:[#allocation27_spill]]  ;;  %v2071_v44 = vmul.f32 %v2017_v2, %v2017_v2  ;;  %v2072_v46 = vmul.f32 %v2020_v26, %v2020_v26  ;;  %v2073_v23 = vmul.f32 %v2790_v40, %v2790_v40  ;;  %s2094_s29 = scalar_lea.vmem [#allocation4], %s2504_s10  ;;  %v2054_v12 = vld [vmem:[#allocation5] sm:$0x1]  ;;  %v2070_v15 = vld [vmem:[#allocation6] sm:$0x1] }
 0x461   : > { %2095 = vst [vmem:[%s2094_s29] sm:$0xff] %v2017_v2  ;;  %2096 = vst [vmem:[%s2094_s29 + $0x8] sm:$0xff] %v2020_v26  ;;  %v2074_v47 = vmul.f32 %v2791_v30, %v2791_v30  ;;  %v2075_v51 = vmul.f32 %v2033_v8, %v2033_v8  ;;  %v2076_v60 = vmul.f32 %v2036_v38, %v2036_v38 }
 0x462   : > { %2097 = vst [vmem:[%s2094_s29 + $0x10] sm:$0xff] %v2790_v40  ;;  %2098 = vst [vmem:[%s2094_s29 + $0x18] sm:$0xff] %v2791_v30  ;;  %v2056_v48 = vadd.f32 %v2790_v40, %v2055_v42  ;;  %v2079_v22 = vadd.f32 %v2072_v46, %v2071_v44  ;;  %v2077_v50 = vmul.f32 %v2794_v5, %v2794_v5 }
 0x463   : > { %2099 = vst [vmem:[%s2094_s29 + $0x20] sm:$0xff] %v2033_v8  ;;  %2100 = vst [vmem:[%s2094_s29 + $0x28] sm:$0xff] %v2036_v38  ;;  %v2078_v57 = vmul.f32 %v2795_v1, %v2795_v1 }
 0x464   : > { %2101 = vst [vmem:[%s2094_s29 + $0x30] sm:$0xff] %v2794_v5  ;;  %2102 = vst [vmem:[%s2094_s29 + $0x38] sm:$0xff] %v2795_v1  ;;  %v2057_v49 = vadd.f32 %v2791_v30, %v2056_v48  ;;  %v2080_v0 = vadd.f32 %v2079_v22, %v2073_v23 }
 0x466   : > { %v2058_v63 = vadd.f32 %v2057_v49, %v2033_v8  ;;  %v2081_v3 = vadd.f32 %v2080_v0, %v2074_v47  ;;  %p2516_p9 = scmp.ne.s32.totalorder %s4114_s9, 1 }
 0x467   : > { %s4115_s30 = sld [smem:[#allocation39_spill]] (!%p2516_p9)  ;;  %s4116_s6 = sld [smem:[#allocation40_spill]] (!%p2516_p9) }
 0x468   : > { %v2059_v52 = vadd.f32 %v2058_v63, %v2036_v38  ;;  %v2082_v37 = vadd.f32 %v2081_v3, %v2075_v51 }
 0x46a   : > { %v2060_v55 = vadd.f32 %v2794_v5, %v2059_v52  ;;  %v2083_v58 = vadd.f32 %v2082_v37, %v2076_v60 }
 0x46c   : > { %v2061_v39 = vadd.f32 %v2795_v1, %v2060_v55  ;;  %v2084_v61 = vadd.f32 %v2083_v58, %v2077_v50 }
 0x46d   : > { %v2113_v31 = vld [vmem:[%s4115_s30] sm:$0x1] (!%p2516_p9) }
 0x46e   : > { %v2062_v43 = vrot.slane %v2061_v39, 4  ;;  %v2085_v6 = vadd.f32 %v2084_v61, %v2078_v57  ;;  %v2118_v34 = vld [vmem:[%s4116_s6] sm:$0x1] (!%p2516_p9) }
 0x470   : > { %v2063_v4 = vadd.f32 %v2062_v43, %v2061_v39  ;;  %v2086_v56 = vrot.slane %v2085_v6, 4 }
 0x472   : > { %v2064_v10 = vrot.slane %v2063_v4, 2  ;;  %v2087_v59 = vadd.f32 %v2086_v56, %v2085_v6 }
 0x474   : > { %v2065_v11 = vadd.f32 %v2064_v10, %v2063_v4  ;;  %v2088_v62 = vrot.slane %v2087_v59, 2 }
 0x476   : > { %v2066_v54 = vrot.slane %v2065_v11, 1  ;;  %v2089_v53 = vadd.f32 %v2088_v62, %v2087_v59 }
 0x478   : > { %v2067_v13 = vadd.f32 %v2066_v54, %v2065_v11  ;;  %v2090_v14 = vrot.slane %v2089_v53, 1  ;;  %2106 = sbr.rel (%p2516_p9) target bundleno = 1182 (0x49e), region = 112 }
 0x47a   : > { %v2068_v9 = vadd.f32 %v2067_v13, %v2054_v12  ;;  %v2091_v17 = vadd.f32 %v2090_v14, %v2089_v53 }
 0x47c   : > { %2069 = vst [vmem:[#allocation5] sm:$0x1] %v2068_v9  ;;  %v2092_v19 = vadd.f32 %v2091_v17, %v2070_v15 }
 0x47e   : > { %2093 = vst [vmem:[#allocation6] sm:$0x1] %v2092_v19 }
 0x483   : > { %v2107_v7 = vld [vmem:[#allocation5] sm:$0x1] }
 0x484   : > { %v2108_v24 = vmul.f32 0.0078125, %v2107_v7 }
 0x485   : > { %v2109_v21 = vld [vmem:[#allocation6] sm:$0x1] }
 0x486   : > { %v2110_v25 = vmul.f32 0.0078125, %v2109_v21  ;;  %v2111_v27 = vmul.f32 %v2108_v24, %v2108_v24 }
 0x488   : > { %v2112_v28 = vsub.f32 %v2110_v25, %v2111_v27 }
 0x48a   : > { %v2114_v29 = vadd.f32 1e-05, %v2112_v28 }
 0x48c   : > { %3080 = vrsqrt.f32 %v2114_v29 }
 0x496   : > { %v3081_v32 = vpop.eup %3080 }
 0x497   : > { %v2116_v33 = vmul.f32 %v3081_v32, %v2113_v31 }
 0x499   : > { %2117 = vst [vmem:[#allocation11] sm:$0x1] %v2116_v33  ;;  %v2119_v35 = vmul.f32 %v2116_v33, %v2108_v24 }
 0x49b   : > { %v2120_v45 = vsub.f32 %v2118_v34, %v2119_v35 }
 0x49d   : > { %2121 = vst [vmem:[#allocation12] sm:$0x1] %v2120_v45 }
 0x49e PF: > { %p2517_p6 = scmp.ne.s32.totalorder %s3314_s20, 3 }
 0x49f   : > { %s4117_s3 = sld [smem:[#allocation27_spill]] (!%p2517_p6)  ;;  %v2166_v20 = vld [vmem:[%s3661_s24] sm:$0xff] (!%p2517_p6)  ;;  %v2167_v30 = vld [vmem:[%s3661_s24 + $0x8] sm:$0xff] (!%p2517_p6)  ;;  %v2168_v41 = vld [vmem:[%s3661_s24 + $0x10] sm:$0xff] (!%p2517_p6) }
 0x4a0   : > { %2125 = sbr.rel (%p2517_p6) target bundleno = 1204 (0x4b4), region = 116  ;;  %v2519_v18 = vld [vmem:[#allocation11] ss:$0 sm:$0xff] (!%p2517_p6)  ;;  %v2170_v51 = vld [vmem:[%s3661_s24 + $0x20] sm:$0xff] (!%p2517_p6)  ;;  %v2171_v52 = vld [vmem:[%s3661_s24 + $0x28] sm:$0xff] (!%p2517_p6) }
 0x4a1   : > { %v2169_v49 = vld [vmem:[%s3661_s24 + $0x18] sm:$0xff] (!%p2517_p6)  ;;  %v2172_v61 = vld [vmem:[%s3661_s24 + $0x30] sm:$0xff] (!%p2517_p6) }
 0x4a2   : > { %v2173_v43 = vld [vmem:[%s3661_s24 + $0x38] sm:$0xff] (!%p2517_p6) }
 0x4a4   : > { %v2520_v36 = vld [vmem:[#allocation12] ss:$0 sm:$0xff] (!%p2517_p6) }
 0x4a5   : > { %s2518_s22 = sshll.u32 (!%p2517_p6), %s4117_s3, 6 }
 0x4a6   : > { %s2127_s26 = scalar_lea.vmem (!%p2517_p6), [#allocation4], %s2518_s22 }
 0x4a7   : > { %v2128_v16 = vld [vmem:[%s2127_s26] sm:$0xff]  ;;  %v2129_v40 = vld [vmem:[%s2127_s26 + $0x8] sm:$0xff]  ;;  %v2130_v5 = vld [vmem:[%s2127_s26 + $0x10] sm:$0xff] }
 0x4a8   : > { %v2143_v2 = vmul.f32 %v2519_v18, %v2128_v16  ;;  %v2144_v8 = vmul.f32 %v2519_v18, %v2129_v40  ;;  %v2145_v1 = vmul.f32 %v2519_v18, %v2130_v5  ;;  %v2131_v26 = vld [vmem:[%s2127_s26 + $0x18] sm:$0xff]  ;;  %v2132_v38 = vld [vmem:[%s2127_s26 + $0x20] sm:$0xff]  ;;  %v2133_v46 = vld [vmem:[%s2127_s26 + $0x28] sm:$0xff] }
 0x4a9   : > { %v2146_v42 = vmul.f32 %v2519_v18, %v2131_v26  ;;  %v2147_v44 = vmul.f32 %v2519_v18, %v2132_v38  ;;  %v2134_v23 = vld [vmem:[%s2127_s26 + $0x30] sm:$0xff]  ;;  %v2148_v0 = vmul.f32 %v2519_v18, %v2133_v46  ;;  %v2135_v63 = vld [vmem:[%s2127_s26 + $0x38] sm:$0xff] }
 0x4aa   : > { %v2158_v48 = vadd.f32 %v2520_v36, %v2143_v2  ;;  %v2159_v47 = vadd.f32 %v2520_v36, %v2144_v8  ;;  %v2160_v22 = vadd.f32 %v2520_v36, %v2145_v1  ;;  %v2149_v50 = vmul.f32 %v2519_v18, %v2134_v23 }
 0x4ab   : > { %v2161_v60 = vadd.f32 %v2520_v36, %v2146_v42  ;;  %v2162_v3 = vadd.f32 %v2520_v36, %v2147_v44  ;;  %v2150_v37 = vmul.f32 %v2519_v18, %v2135_v63  ;;  %v2163_v39 = vadd.f32 %v2520_v36, %v2148_v0 }
 0x4ac   : > { %v2174_v55 = vadd.f32 %v2166_v20, %v2158_v48  ;;  %v2175_v57 = vadd.f32 %v2167_v30, %v2159_v47  ;;  %v2176_v58 = vadd.f32 %v2168_v41, %v2160_v22  ;;  %v2164_v56 = vadd.f32 %v2520_v36, %v2149_v50 }
 0x4ad   : > { %v2177_v6 = vadd.f32 %v2169_v49, %v2161_v60  ;;  %v2178_v4 = vadd.f32 %v2170_v51, %v2162_v3  ;;  %v2165_v10 = vadd.f32 %v2520_v36, %v2150_v37  ;;  %v2179_v54 = vadd.f32 %v2171_v52, %v2163_v39 }
 0x4ae   : > { %v2182_v59 = vmax.f32 %v2174_v55, 0.0  ;;  %v2183_v11 = vmax.f32 %v2175_v57, 0.0  ;;  %v2184_v62 = vmax.f32 %v2176_v58, 0.0  ;;  %v2180_v13 = vadd.f32 %v2172_v61, %v2164_v56 }
 0x4af   : > { %v2185_v53 = vmax.f32 %v2177_v6, 0.0  ;;  %v2186_v12 = vmax.f32 %v2178_v4, 0.0  ;;  %v2181_v14 = vadd.f32 %v2173_v43, %v2165_v10  ;;  %v2187_v15 = vmax.f32 %v2179_v54, 0.0 }
 0x4b0   : > { %2190 = vst [vmem:[%s3678_s11] sm:$0xff] %v2182_v59  ;;  %2191 = vst [vmem:[%s3678_s11 + $0x8] sm:$0xff] %v2183_v11  ;;  %v2188_v9 = vmax.f32 %v2180_v13, 0.0 }
 0x4b1   : > { %2192 = vst [vmem:[%s3678_s11 + $0x10] sm:$0xff] %v2184_v62  ;;  %2193 = vst [vmem:[%s3678_s11 + $0x18] sm:$0xff] %v2185_v53  ;;  %v2189_v17 = vmax.f32 %v2181_v14, 0.0 }
 0x4b2   : > { %2194 = vst [vmem:[%s3678_s11 + $0x20] sm:$0xff] %v2186_v12  ;;  %2195 = vst [vmem:[%s3678_s11 + $0x28] sm:$0xff] %v2187_v15 }
 0x4b3   : > { %2196 = vst [vmem:[%s3678_s11 + $0x30] sm:$0xff] %v2188_v9  ;;  %2197 = vst [vmem:[%s3678_s11 + $0x38] sm:$0xff] %v2189_v17 }
 0x4b4 PF: > { %s4118_s24 = sld [smem:[#allocation27_spill]]  ;;  %s4119_s28 = sld [smem:[#allocation29_spill]] }
 0x4b5   : > { %p2206_p13 = scmp.eq.s32.totalorder %s3314_s20, 3  ;;  %s2214_s5 = sshll.u32 %s3678_s11, 4  ;;  %s3969_s5 = int_to_ptr.vmem [resolvable:$true] %s2214_s5 }
 0x4b6   : > { %s4120_s19 = sld [smem:[#allocation41_spill]]  ;;  %s3978_s12 = scalar_lea.sflag [#allocation15], %s447_s2 }
 0x4b7   : > { %s3196_s25 = scalar_lea.vmem %s3969_s5, 1024  ;;  %s3341_s20 = smov [#allocation21]  }
 0x4b8   : > { %p3197_p2 = scmp.ne.s32.totalorder %s3969_s5, %s3196_s25  ;;  %s3200_s11 = sshll.u32 %s3341_s20, 4  ;;  %s3201_s11 = int_to_ptr.vmem [resolvable:$false] %s3200_s11 }
 0x4b9   : > { %s3202_s30 = scalar_lea.vmem %s3201_s11, 2048  ;;  %p3203_p10 = scmp.lt.s32.totalorder %s3969_s5, %s3201_s11 }
 0x4ba   : > { %s4143_s24 = smov (!%p2206_p13, %s4118_s24), 0  ;;  %p4122_p5 = scmp.ne.s32.totalorder %s4119_s28, 0 }
 0x4bb   : > { %s2527_s1 = sshll.u32 %s4143_s24, 10  ;;  %p3204_p12 = scmp.lt.s32.totalorder %s3202_s30, %s3196_s25 }
 0x4bc   : > { %s4121_s9 = smov %s4120_s19  ;;  %s3974_s29 = scalar_lea.hbm %s4120_s19, %s2527_s1 }
 0x4bd   : > { %p3198_p8 = pnand %p3197_p2, %p4122_p5  ;;  %p3205_p0 = por %p3204_p12, %p3203_p10 }
 0x4bf   : > { %p3199_p3 = pneg %p3198_p8 }
 0x4c1   : > { %p3206_p4 = pnand %p3205_p0, %p3199_p3 }
 0x4c3   : > { %3209 = shalt.err (!%p3206_p4)
}
 0x4c4   : > { %s3210_s2 = scalar_lea.hbm %s3974_s29, 1024  ;;  %s3214_s6 = scalar_lea.hbm %s4121_s9, 2048 }
 0x4c5   : > { %p3211_p1 = scmp.ne.s32.totalorder %s3974_s29, %s3210_s2  ;;  %p3215_p9 = scmp.lt.u32.totalorder %s3974_s29, %s4121_s9 }
 0x4c6   : > { %p3216_p6 = scmp.lt.u32.totalorder %s3214_s6, %s3210_s2  ;;  %p3218_p2 = scmp.lt.u32.totalorder %s3210_s2, %s3974_s29 }
 0x4c7   : > { %p3212_p7 = pnand %p3211_p1, %p4122_p5 }
 0x4c8   : > { %p3217_p13 = por %p3216_p6, %p3215_p9 }
 0x4c9   : > { %p3213_p11 = pneg %p3212_p7 }
 0x4ca   : > { %p3219_p8 = por %p3218_p2, %p3217_p13 }
 0x4cc   : > { %p3220_p3 = pnand %p3219_p8, %p3213_p11 }
 0x4ce   : > { %3223 = shalt.err (!%p3220_p3)
}
 0x4cf   : > { %s3342_s26 = smov 128   ;;  %s3343_s24 = smov 8  }
 0x4d0   : > { %2858 = dma.vmem_to_hbm [thread:$0]  (%p4122_p5), %s3969_s5, 1024, %s3974_s29, %s3978_s12, %s3342_s26, %s3342_s26, %s3343_s24  }
 0x4d1 PF: > { %s4123_s1 = sld [smem:[#allocation26_spill]]  ;;  %s4124_s13 = sld [smem:[#allocation30_spill]] }
 0x4d2   : > { %p2885_p10 = scmp.ge.s32.totalorder %s3326_s23, 2 }
 0x4d7   : > { %s2229_s10 = sand.u32 1, %s4123_s1   ;;  %p4125_p12 = scmp.ne.s32.totalorder %s4124_s13, 0 }
 0x4d8   : > { %s2230_s19 = scalar_lea.sflag [#allocation15], %s2229_s10 }
 0x4d9   : > { %p2875_p0 = pnand %p2885_p10, %p4125_p12 }
 0x4db   : > { %3281 = dma.done.wait (!%p2875_p0), %s2230_s19, 1024  }
 0x4dc   : > { %3283 = vsyncadd (!%p2875_p0), %s2230_s19, 4294966272  ;;  %s28_s23 = sadd.s32 1, %s3326_s23   ;;  %s4126_s20 = sld [smem:[#allocation28_spill]] }
 0x4dd   : > { %p25_p4 = scmp.ge.s32.totalorder %s28_s23, 10   ;;  %s4127_s22 = sld [smem:[#allocation31_spill]] }
 0x4de   : > { %s4128_s13 = smov %s3290_s14  ;;  %s4129_s14 = smov %s3294_s15 }
 0x4df   : > { %s4130_s15 = smov %s3613_s27  ;;  %s4131_s16 = smov %s3302_s17 }
 0x4e0   : > { %s4132_s17 = smov %s3306_s18  ;;  %s4133_s18 = smov %s3608_s8 }
 0x4e1   : > { %s4134_s19 = smov %s3318_s21  ;;  %s4135_s21 = smov %s4137_s7 }
 0x4e2   :  { %27 = sbr.rel (!%p25_p4) target bundleno = 22 (0x16), region = 163 }
 0x4e9   :  { %2235 = vsyncpa [#allocation14], 1 }
 0x4ea   :  { %2237 = vsyncpa [#allocation14 + $0x1], 1 }
 0x4eb   :  { %2238 = vsyncpa [#allocation17], 1 }
 0x4ec   :  { %2239 = vsyncpa [#allocation20], 1 }
 0x4ed   :  { %2240 = vsyncpa [#allocation15], 1 }
 0x4ee   :  { %2242 = vsyncpa [#allocation15 + $0x1], 1 }

</bundles_post_ra>
